<compile_context>
chip_gen: v7x
topology: tpu7x:2x2x1
jax: 0.10.0
libtpu: 0.0.40
codegen_flags: <defaults>
</compile_context>

<pallas_src>
import jax
import jax.numpy as jnp
from jax import lax
from jax.experimental import pallas as pl
from jax.experimental.pallas import tpu as pltpu


def fusion_head_kernel(
    v_ref, a_ref,                     # (bt, 512) / (bt, 1024) f32 temporal means (pre-ReLU)
    wv_ref, bv_ref,                   # fc_model_video : 512(=400+pad) -> 256  (bf16 W, f32 b)
    wa_ref, ba_ref,                   # fc_model_audio : 1024 -> 256           (bf16 W, f32 b)
    w1v_ref, w1a_ref, b1_ref,         # attention[0]   : 512 -> 64, split into 2x(256,64) bf16
    w2_ref, b2_ref,                   # attention[2]   : 64 -> 32   (bf16 W, f32 b)
    w3_ref, b3_ref,                   # attention[4]   : 32 -> 2    (f32, tiny)
    wo_ref, bo_ref,                   # fc_model       : 256 -> 128 (101 classes + zero pad)
    logits_ref, att_ref, xcat_ref,    # (bt, 128), (bt, 128), (bt, 512)
):
    bf16 = jnp.bfloat16
    f32 = jnp.float32

    # ReLU after the (wrapper-side) temporal average pool.
    v = jnp.maximum(v_ref[...], 0.0)
    a = jnp.maximum(a_ref[...], 0.0)

    # ---- modality projections to 256 (bf16 operands, f32 MXU accumulation) ---
    x_vid = jnp.dot(v.astype(bf16), wv_ref[...], preferred_element_type=f32) + bv_ref[...]
    x_aud = jnp.dot(a.astype(bf16), wa_ref[...], preferred_element_type=f32) + ba_ref[...]

    # Write the fused (bt, 512) [x_vid | x_audio] output slab, but keep feeding the
    # attention MLP from the vreg-resident values (no VMEM store->load round trip).
    xcat_ref[:, 0:256] = x_vid
    xcat_ref[:, 256:512] = x_aud

    xv16 = x_vid.astype(bf16)
    xa16 = x_aud.astype(bf16)

    # ---- attention MLP (w1 pre-split so the concat never has to be reloaded) -
    h1 = jnp.dot(xv16, w1v_ref[...], preferred_element_type=f32)
    h1 = h1 + jnp.dot(xa16, w1a_ref[...], preferred_element_type=f32) + b1_ref[...]
    h1 = jnp.maximum(h1, 0.0)
    h2 = jnp.maximum(
        jnp.dot(h1.astype(bf16), w2_ref[...], preferred_element_type=f32) + b2_ref[...],
        0.0)
    h3 = jnp.dot(h2, w3_ref[...], preferred_element_type=f32) + b3_ref[...]     # (bt, 2)

    # Exact 2-way softmax (user-visible probabilities): VPU + EUP, no lane reduce.
    h3v, h3a = h3[:, 0:1], h3[:, 1:2]
    m = jnp.maximum(h3v, h3a)
    ev = jnp.exp(h3v - m)
    ea = jnp.exp(h3a - m)
    inv = pl.reciprocal(ev + ea, approx=False)
    att_v = ev * inv                                                            # (bt, 1)
    att_a = ea * inv                                                            # (bt, 1)

    # Lane-dense attention store: (bt, 128), probabilities in lanes 0/1, zeros elsewhere.
    lane = lax.broadcasted_iota(jnp.int32, att_ref.shape, dimension=1)
    att_ref[...] = jnp.where(lane == 0, att_v, jnp.where(lane == 1, att_a, 0.0))

    # ---- attention-weighted fusion (do_warm_up=False branch) + classifier ----
    x = jnp.maximum(x_vid * att_v + x_aud * att_a, 0.0)
    # TODO(synk): nn.Dropout(p=0.5) is identity in eval mode; training-mode mask not applied.
    logits_ref[...] = jnp.dot(x.astype(bf16), wo_ref[...],
                              preferred_element_type=f32) + bo_ref[...]


def fusion_head(vid_feat, aud_feat, params, *, block_b=128):
    """I3dRgbSoundAttentionUcf101 fusion head (eval mode, do_warm_up=False).

    vid_feat: (B, 400, Tv), aud_feat: (B, 1024, Ta) -- backbone NCT feature maps.
    Returns (logits, audio_attention, x_vid, x_audio) like the PyTorch forward.
    """
    f32 = jnp.float32
    bf16 = jnp.bfloat16
    B = vid_feat.shape[0]

    # Temporal average pool in the wrapper: XLA fuses the reduce with the backbone
    # output read, so the kernel only streams (B, C) activations (no transpose copy).
    v = jnp.mean(vid_feat.astype(f32), axis=2)                       # (B, 400)
    a = jnp.mean(aud_feat.astype(f32), axis=2)                       # (B, 1024)

    # Zero-pad video channels 400 -> 512: dense vregs and clean K=512 into the MXU
    # (matching wv rows are zero-padded, so the result is unchanged).
    v = jnp.pad(v, ((0, 0), (0, 112)))                               # (B, 512)

    # ---- batch tiling --------------------------------------------------------
    b8 = pl.cdiv(B, 8) * 8
    bt = max(8, (min(int(block_b), b8) // 8) * 8)
    # v7x has two TensorCores; with dimension_semantics=("parallel",) a single-step
    # grid leaves one idle, so split large batches into >= 2 steps.
    if b8 // bt < 2 and b8 >= 128:
        bt = pl.cdiv(pl.cdiv(b8, 2), 8) * 8
    b_pad = pl.cdiv(B, bt) * bt
    if b_pad != B:
        v = jnp.pad(v, ((0, b_pad - B), (0, 0)))
        a = jnp.pad(a, ((0, b_pad - B), (0, 0)))
    grid = (b_pad // bt,)

    # ---- weights (stored (in, out); large matmul operands as bf16, f32 biases) -
    wv = jnp.pad(params["wv"], ((0, 112), (0, 0))).astype(bf16)      # (512, 256)
    wa = params["wa"].astype(bf16)                                   # (1024, 256)
    w1v = params["w1"][:256].astype(bf16)                            # (256, 64)
    w1a = params["w1"][256:].astype(bf16)                            # (256, 64)
    w2 = params["w2"].astype(bf16)                                   # (64, 32)
    w3 = params["w3"].astype(f32)                                    # (32, 2)
    wo = jnp.pad(params["wo"], ((0, 0), (0, 27))).astype(bf16)       # (256, 128)
    bo = jnp.pad(params["bo"], (0, 27)).astype(f32).reshape(1, 128)

    weight_inputs = [
        wv, params["bv"].astype(f32).reshape(1, 256),
        wa, params["ba"].astype(f32).reshape(1, 256),
        w1v, w1a, params["b1"].astype(f32).reshape(1, 64),
        w2, params["b2"].astype(f32).reshape(1, 32),
        w3, params["b3"].astype(f32).reshape(1, 2),
        wo, bo,
    ]
    inputs = [v, a] + weight_inputs

    def const_spec(arr):
        # Whole array resident in VMEM; constant block index -> DMA'd once across the grid.
        return pl.BlockSpec(arr.shape, lambda i, _n=arr.ndim: (0,) * _n)

    in_specs = [
        pl.BlockSpec((bt, 512), lambda i: (i, 0)),
        pl.BlockSpec((bt, 1024), lambda i: (i, 0)),
    ] + [const_spec(x) for x in weight_inputs]

    out_shape = (
        jax.ShapeDtypeStruct((b_pad, 128), f32),   # lane-padded logits (101 real)
        jax.ShapeDtypeStruct((b_pad, 128), f32),   # lane-padded attention (2 real)
        jax.ShapeDtypeStruct((b_pad, 512), f32),   # [x_vid | x_audio]
    )
    out_specs = (
        pl.BlockSpec((bt, 128), lambda i: (i, 0)),
        pl.BlockSpec((bt, 128), lambda i: (i, 0)),
        pl.BlockSpec((bt, 512), lambda i: (i, 0)),
    )

    # ---- VMEM budget derived from the chosen tile (double-buffered I/O) ------
    weight_bytes = sum(int(x.size) * x.dtype.itemsize for x in weight_inputs)
    io_bytes_per_step = bt * (512 + 1024 + 128 + 128 + 512) * 4
    vmem_needed = 2 * io_bytes_per_step + 2 * weight_bytes + (2 << 20)
    vmem_limit = int(min(max(vmem_needed, 8 << 20), 48 << 20))       # cap for v7x (64 MiB/TC)

    flops = 2 * b_pad * (512 * 256 + 1024 * 256 + 2 * 256 * 64 + 64 * 32 + 32 * 2 + 256 * 128)
    bytes_accessed = (
        sum(int(x.size) * x.dtype.itemsize for x in inputs)
        + b_pad * (128 + 128 + 512) * 4
    )

    logits_pad, att_pad, xcat = pl.pallas_call(
        fusion_head_kernel,
        grid=grid,
        in_specs=in_specs,
        out_specs=out_specs,
        out_shape=out_shape,
        compiler_params=pltpu.CompilerParams(
            dimension_semantics=("parallel",),
            vmem_limit_bytes=vmem_limit,
        ),
        cost_estimate=pl.CostEstimate(
            flops=flops, transcendentals=3 * b_pad, bytes_accessed=bytes_accessed),
    )(*inputs)

    logits = logits_pad[:B, :101]
    att = att_pad[:B, :2]
    x_vid = xcat[:B, :256]
    x_aud = xcat[:B, 256:]
    return logits, att[:, 1], x_vid, x_aud


def _init_linear(key, fan_in, fan_out):
    """Deterministic PyTorch-like Linear init; weight stored as (in, out)."""
    kw, kb = jax.random.split(key)
    bound = 1.0 / (fan_in ** 0.5)
    w = jax.random.uniform(kw, (fan_in, fan_out), jnp.float32, -bound, bound)
    b = jax.random.uniform(kb, (fan_out,), jnp.float32, -bound, bound)
    return w, b


def make_params(key):
    keys = jax.random.split(key, 6)
    wv, bv = _init_linear(keys[0], 400, 256)
    wa, ba = _init_linear(keys[1], 1024, 256)
    w1, b1 = _init_linear(keys[2], 512, 64)
    w2, b2 = _init_linear(keys[3], 64, 32)
    w3, b3 = _init_linear(keys[4], 32, 2)
    wo, bo = _init_linear(keys[5], 256, 101)
    return dict(wv=wv, bv=bv, wa=wa, ba=ba, w1=w1, b1=b1,
                w2=w2, b2=b2, w3=w3, b3=b3, wo=wo, bo=bo)


def reference_head(vid_feat, aud_feat, p):
    """Plain-JAX reference of the PyTorch forward (eval mode, do_warm_up=False).

    Mirrors the kernel's bf16 quantization of the matmul operands (f32 accumulation
    everywhere) so the comparison isolates kernel correctness.
    """
    q = lambda t: t.astype(jnp.bfloat16).astype(jnp.float32)
    v = jnp.maximum(jnp.mean(vid_feat, axis=2), 0.0)
    a = jnp.maximum(jnp.mean(aud_feat, axis=2), 0.0)
    x_vid = q(v) @ q(p["wv"]) + p["bv"]
    x_aud = q(a) @ q(p["wa"]) + p["ba"]
    cat = jnp.concatenate([x_vid, x_aud], axis=1)
    h = jnp.maximum(q(cat) @ q(p["w1"]) + p["b1"], 0.0)
    h = jnp.maximum(q(h) @ q(p["w2"]) + p["b2"], 0.0)
    h = h @ p["w3"] + p["b3"]
    att = jax.nn.softmax(h, axis=1)
    x = jnp.maximum(x_vid * att[:, 0:1] + x_aud * att[:, 1:2], 0.0)
    logits = q(x) @ q(p["wo"]) + p["bo"]
    return logits, att[:, 1], x_vid, x_aud


if __name__ == "__main__":
    key = jax.random.PRNGKey(0)
    k_params, k_vid, k_aud = jax.random.split(key, 3)

    B, Tv, Ta = 4, 8, 8
    params = make_params(k_params)
    vid_feat = jax.random.normal(k_vid, (B, 400, Tv), jnp.float32)   # i3d output features
    aud_feat = jax.random.normal(k_aud, (B, 1024, Ta), jnp.float32)  # soundnet output features

    outs = fusion_head(vid_feat, aud_feat, params)
    outs = jax.block_until_ready(outs)

    refs = reference_head(vid_feat, aud_feat, params)
    names = ("logits", "audio_attention", "x_vid", "x_audio")
    for name, o, r in zip(names, outs, refs):
        assert o.shape == r.shape, (name, o.shape, r.shape)
        err = float(jnp.max(jnp.abs(o - r)))
        assert err < 2e-3, (name, err)

    print("KERNEL_OK")
</pallas_src>

<mosaic_0001>
module attributes {stable_mosaic.version = 11 : i64} {
  func.func @fusion_head_kernel(%arg0: i32, %arg1: memref<8x512xf32, #tpu.memory_space<vmem>>, %arg2: memref<8x1024xf32, #tpu.memory_space<vmem>>, %arg3: memref<512x256xbf16, #tpu.memory_space<vmem>>, %arg4: memref<1x256xf32, #tpu.memory_space<vmem>>, %arg5: memref<1024x256xbf16, #tpu.memory_space<vmem>>, %arg6: memref<1x256xf32, #tpu.memory_space<vmem>>, %arg7: memref<256x64xbf16, #tpu.memory_space<vmem>>, %arg8: memref<256x64xbf16, #tpu.memory_space<vmem>>, %arg9: memref<1x64xf32, #tpu.memory_space<vmem>>, %arg10: memref<64x32xbf16, #tpu.memory_space<vmem>>, %arg11: memref<1x32xf32, #tpu.memory_space<vmem>>, %arg12: memref<32x2xf32, #tpu.memory_space<vmem>>, %arg13: memref<1x2xf32, #tpu.memory_space<vmem>>, %arg14: memref<256x128xbf16, #tpu.memory_space<vmem>>, %arg15: memref<1x128xf32, #tpu.memory_space<vmem>>, %arg16: memref<8x128xf32, #tpu.memory_space<vmem>>, %arg17: memref<8x128xf32, #tpu.memory_space<vmem>>, %arg18: memref<8x512xf32, #tpu.memory_space<vmem>>) attributes {dimension_semantics = [#tpu.dimension_semantics<parallel>], iteration_bounds = array<i64: 1>, scalar_prefetch = 0 : i64, scratch_operands = 0 : i64, tpu.core_type = #tpu.core_type<tc>, window_params = [{transform_indices = @transform_0, window_bounds = array<i64: 8, 512>}, {transform_indices = @transform_1, window_bounds = array<i64: 8, 1024>}, {pipeline_mode = #tpu.pipeline_mode<synchronous>, transform_indices = @transform_2, window_bounds = array<i64: 512, 256>}, {pipeline_mode = #tpu.pipeline_mode<synchronous>, transform_indices = @transform_3, window_bounds = array<i64: 1, 256>}, {pipeline_mode = #tpu.pipeline_mode<synchronous>, transform_indices = @transform_4, window_bounds = array<i64: 1024, 256>}, {pipeline_mode = #tpu.pipeline_mode<synchronous>, transform_indices = @transform_5, window_bounds = array<i64: 1, 256>}, {pipeline_mode = #tpu.pipeline_mode<synchronous>, transform_indices = @transform_6, window_bounds = array<i64: 256, 64>}, {pipeline_mode = #tpu.pipeline_mode<synchronous>, transform_indices = @transform_7, window_bounds = array<i64: 256, 64>}, {pipeline_mode = #tpu.pipeline_mode<synchronous>, transform_indices = @transform_8, window_bounds = array<i64: 1, 64>}, {pipeline_mode = #tpu.pipeline_mode<synchronous>, transform_indices = @transform_9, window_bounds = array<i64: 64, 32>}, {pipeline_mode = #tpu.pipeline_mode<synchronous>, transform_indices = @transform_10, window_bounds = array<i64: 1, 32>}, {pipeline_mode = #tpu.pipeline_mode<synchronous>, transform_indices = @transform_11, window_bounds = array<i64: 32, 2>}, {pipeline_mode = #tpu.pipeline_mode<synchronous>, transform_indices = @transform_12, window_bounds = array<i64: 1, 2>}, {pipeline_mode = #tpu.pipeline_mode<synchronous>, transform_indices = @transform_13, window_bounds = array<i64: 256, 128>}, {pipeline_mode = #tpu.pipeline_mode<synchronous>, transform_indices = @transform_14, window_bounds = array<i64: 1, 128>}, {transform_indices = @transform_15, window_bounds = array<i64: 8, 128>}, {transform_indices = @transform_16, window_bounds = array<i64: 8, 128>}, {transform_indices = @transform_17, window_bounds = array<i64: 8, 512>}]} {
    %c0 = arith.constant 0 : index
    %c0_0 = arith.constant 0 : index
    %0 = vector.load %arg1[%c0, %c0_0] : memref<8x512xf32, #tpu.memory_space<vmem>>, vector<8x512xf32>
    %cst = arith.constant 0.000000e+00 : f32
    %1 = vector.broadcast %cst : f32 to vector<8x512xf32>
    %2 = arith.maximumf %0, %1 : vector<8x512xf32>
    %c0_1 = arith.constant 0 : index
    %c0_2 = arith.constant 0 : index
    %3 = vector.load %arg2[%c0_1, %c0_2] : memref<8x1024xf32, #tpu.memory_space<vmem>>, vector<8x1024xf32>
    %cst_3 = arith.constant 0.000000e+00 : f32
    %4 = vector.broadcast %cst_3 : f32 to vector<8x1024xf32>
    %5 = arith.maximumf %3, %4 : vector<8x1024xf32>
    %6 = arith.truncf %2 : vector<8x512xf32> to vector<8x512xbf16>
    %c0_4 = arith.constant 0 : index
    %c0_5 = arith.constant 0 : index
    %7 = vector.load %arg3[%c0_4, %c0_5] : memref<512x256xbf16, #tpu.memory_space<vmem>>, vector<512x256xbf16>
    %cst_6 = arith.constant dense<0.000000e+00> : vector<8x256xf32>
    %8 = tpu.matmul %6, %7, %cst_6 {dimension_numbers = #tpu.dot_dimension_numbers<[1], [0], [0], [1], [0, 0, 1, 1], [], []>} : vector<8x512xbf16>, vector<512x256xbf16>, vector<8x256xf32> -> vector<8x256xf32>
    %c0_7 = arith.constant 0 : index
    %c0_8 = arith.constant 0 : index
    %9 = vector.load %arg4[%c0_7, %c0_8] : memref<1x256xf32, #tpu.memory_space<vmem>>, vector<1x256xf32>
    %10 = vector.broadcast %9 : vector<1x256xf32> to vector<8x256xf32>
    %11 = arith.addf %8, %10 : vector<8x256xf32>
    %12 = arith.truncf %5 : vector<8x1024xf32> to vector<8x1024xbf16>
    %c0_9 = arith.constant 0 : index
    %c0_10 = arith.constant 0 : index
    %13 = vector.load %arg5[%c0_9, %c0_10] : memref<1024x256xbf16, #tpu.memory_space<vmem>>, vector<1024x256xbf16>
    %cst_11 = arith.constant dense<0.000000e+00> : vector<8x256xf32>
    %14 = tpu.matmul %12, %13, %cst_11 {dimension_numbers = #tpu.dot_dimension_numbers<[1], [0], [0], [1], [0, 0, 1, 1], [], []>} : vector<8x1024xbf16>, vector<1024x256xbf16>, vector<8x256xf32> -> vector<8x256xf32>
    %c0_12 = arith.constant 0 : index
    %c0_13 = arith.constant 0 : index
    %15 = vector.load %arg6[%c0_12, %c0_13] : memref<1x256xf32, #tpu.memory_space<vmem>>, vector<1x256xf32>
    %16 = vector.broadcast %15 : vector<1x256xf32> to vector<8x256xf32>
    %17 = arith.addf %14, %16 : vector<8x256xf32>
    %c0_14 = arith.constant 0 : index
    %c0_15 = arith.constant 0 : index
    %18 = vector.load %arg18[%c0_14, %c0_15] : memref<8x512xf32, #tpu.memory_space<vmem>>, vector<8x256xf32>
    tpu.vector_store %arg18[%c0_14, %c0_15], %11 {strides = array<i32>} : memref<8x512xf32, #tpu.memory_space<vmem>>, vector<8x256xf32>,
    %c0_16 = arith.constant 0 : index
    %c256 = arith.constant 256 : index
    %19 = vector.load %arg18[%c0_16, %c256] : memref<8x512xf32, #tpu.memory_space<vmem>>, vector<8x256xf32>
    tpu.vector_store %arg18[%c0_16, %c256], %17 {strides = array<i32>} : memref<8x512xf32, #tpu.memory_space<vmem>>, vector<8x256xf32>,
    %20 = arith.truncf %11 : vector<8x256xf32> to vector<8x256xbf16>
    %21 = arith.truncf %17 : vector<8x256xf32> to vector<8x256xbf16>
    %c0_17 = arith.constant 0 : index
    %c0_18 = arith.constant 0 : index
    %22 = vector.load %arg7[%c0_17, %c0_18] : memref<256x64xbf16, #tpu.memory_space<vmem>>, vector<256x64xbf16>
    %cst_19 = arith.constant dense<0.000000e+00> : vector<8x64xf32>
    %23 = tpu.matmul %20, %22, %cst_19 {dimension_numbers = #tpu.dot_dimension_numbers<[1], [0], [0], [1], [0, 0, 1, 1], [], []>} : vector<8x256xbf16>, vector<256x64xbf16>, vector<8x64xf32> -> vector<8x64xf32>
    %c0_20 = arith.constant 0 : index
    %c0_21 = arith.constant 0 : index
    %24 = vector.load %arg8[%c0_20, %c0_21] : memref<256x64xbf16, #tpu.memory_space<vmem>>, vector<256x64xbf16>
    %cst_22 = arith.constant dense<0.000000e+00> : vector<8x64xf32>
    %25 = tpu.matmul %21, %24, %cst_22 {dimension_numbers = #tpu.dot_dimension_numbers<[1], [0], [0], [1], [0, 0, 1, 1], [], []>} : vector<8x256xbf16>, vector<256x64xbf16>, vector<8x64xf32> -> vector<8x64xf32>
    %26 = arith.addf %23, %25 : vector<8x64xf32>
    %c0_23 = arith.constant 0 : index
    %c0_24 = arith.constant 0 : index
    %27 = vector.load %arg9[%c0_23, %c0_24] : memref<1x64xf32, #tpu.memory_space<vmem>>, vector<1x64xf32>
    %28 = vector.broadcast %27 : vector<1x64xf32> to vector<8x64xf32>
    %29 = arith.addf %26, %28 : vector<8x64xf32>
    %cst_25 = arith.constant 0.000000e+00 : f32
    %30 = vector.broadcast %cst_25 : f32 to vector<8x64xf32>
    %31 = arith.maximumf %29, %30 : vector<8x64xf32>
    %32 = arith.truncf %31 : vector<8x64xf32> to vector<8x64xbf16>
    %c0_26 = arith.constant 0 : index
    %c0_27 = arith.constant 0 : index
    %33 = vector.load %arg10[%c0_26, %c0_27] : memref<64x32xbf16, #tpu.memory_space<vmem>>, vector<64x32xbf16>
    %cst_28 = arith.constant dense<0.000000e+00> : vector<8x32xf32>
    %34 = tpu.matmul %32, %33, %cst_28 {dimension_numbers = #tpu.dot_dimension_numbers<[1], [0], [0], [1], [0, 0, 1, 1], [], []>} : vector<8x64xbf16>, vector<64x32xbf16>, vector<8x32xf32> -> vector<8x32xf32>
    %c0_29 = arith.constant 0 : index
    %c0_30 = arith.constant 0 : index
    %35 = vector.load %arg11[%c0_29, %c0_30] : memref<1x32xf32, #tpu.memory_space<vmem>>, vector<1x32xf32>
    %36 = vector.broadcast %35 : vector<1x32xf32> to vector<8x32xf32>
    %37 = arith.addf %34, %36 : vector<8x32xf32>
    %cst_31 = arith.constant 0.000000e+00 : f32
    %38 = vector.broadcast %cst_31 : f32 to vector<8x32xf32>
    %39 = arith.maximumf %37, %38 : vector<8x32xf32>
    %c0_32 = arith.constant 0 : index
    %c0_33 = arith.constant 0 : index
    %40 = vector.load %arg12[%c0_32, %c0_33] : memref<32x2xf32, #tpu.memory_space<vmem>>, vector<32x2xf32>
    %cst_34 = arith.constant dense<0.000000e+00> : vector<8x2xf32>
    %41 = tpu.matmul %39, %40, %cst_34 {dimension_numbers = #tpu.dot_dimension_numbers<[1], [0], [0], [1], [0, 0, 1, 1], [], []>} : vector<8x32xf32>, vector<32x2xf32>, vector<8x2xf32> -> vector<8x2xf32>
    %c0_35 = arith.constant 0 : index
    %c0_36 = arith.constant 0 : index
    %42 = vector.load %arg13[%c0_35, %c0_36] : memref<1x2xf32, #tpu.memory_space<vmem>>, vector<1x2xf32>
    %43 = vector.broadcast %42 : vector<1x2xf32> to vector<8x2xf32>
    %44 = arith.addf %41, %43 : vector<8x2xf32>
    %45 = vector.extract_strided_slice %44 {offsets = [0, 0], sizes = [8, 1], strides = [1, 1]} : vector<8x2xf32> to vector<8x1xf32>
    %46 = vector.extract_strided_slice %44 {offsets = [0, 1], sizes = [8, 1], strides = [1, 1]} : vector<8x2xf32> to vector<8x1xf32>
    %47 = arith.maximumf %45, %46 : vector<8x1xf32>
    %48 = arith.subf %45, %47 : vector<8x1xf32>
    %49 = math.exp %48 : vector<8x1xf32>
    %50 = arith.subf %46, %47 : vector<8x1xf32>
    %51 = math.exp %50 : vector<8x1xf32>
    %52 = arith.addf %49, %51 : vector<8x1xf32>
    %53 = tpu.reciprocal %52 : vector<8x1xf32> -> vector<8x1xf32>
    %54 = arith.mulf %49, %53 : vector<8x1xf32>
    %55 = arith.mulf %51, %53 : vector<8x1xf32>
    %56 = tpu.iota {dimensions = array<i32: 1>} : vector<8x128xi32>
    %c0_i32 = arith.constant 0 : i32
    %57 = vector.broadcast %c0_i32 : i32 to vector<8x128xi32>
    %58 = arith.cmpi eq, %56, %57 : vector<8x128xi32>
    %c1_i32 = arith.constant 1 : i32
    %59 = vector.broadcast %c1_i32 : i32 to vector<8x128xi32>
    %60 = arith.cmpi eq, %56, %59 : vector<8x128xi32>
    %cst_37 = arith.constant 0.000000e+00 : f32
    %61 = vector.shape_cast %55 : vector<8x1xf32> to vector<8x1xf32>
    %62 = vector.broadcast %61 : vector<8x1xf32> to vector<8x128xf32>
    %63 = vector.broadcast %cst_37 : f32 to vector<8x128xf32>
    %64 = arith.select %60, %62, %63 : vector<8x128xi1>, vector<8x128xf32>
    %65 = vector.shape_cast %54 : vector<8x1xf32> to vector<8x1xf32>
    %66 = vector.broadcast %65 : vector<8x1xf32> to vector<8x128xf32>
    %67 = arith.select %58, %66, %64 : vector<8x128xi1>, vector<8x128xf32>
    %c0_38 = arith.constant 0 : index
    %c0_39 = arith.constant 0 : index
    %68 = vector.load %arg17[%c0_38, %c0_39] : memref<8x128xf32, #tpu.memory_space<vmem>>, vector<8x128xf32>
    tpu.vector_store %arg17[%c0_38, %c0_39], %67 {strides = array<i32>} : memref<8x128xf32, #tpu.memory_space<vmem>>, vector<8x128xf32>,
    %69 = vector.broadcast %54 : vector<8x1xf32> to vector<8x256xf32>
    %70 = arith.mulf %11, %69 : vector<8x256xf32>
    %71 = vector.broadcast %55 : vector<8x1xf32> to vector<8x256xf32>
    %72 = arith.mulf %17, %71 : vector<8x256xf32>
    %73 = arith.addf %70, %72 : vector<8x256xf32>
    %cst_40 = arith.constant 0.000000e+00 : f32
    %74 = vector.broadcast %cst_40 : f32 to vector<8x256xf32>
    %75 = arith.maximumf %73, %74 : vector<8x256xf32>
    %76 = arith.truncf %75 : vector<8x256xf32> to vector<8x256xbf16>
    %c0_41 = arith.constant 0 : index
    %c0_42 = arith.constant 0 : index
    %77 = vector.load %arg14[%c0_41, %c0_42] : memref<256x128xbf16, #tpu.memory_space<vmem>>, vector<256x128xbf16>
    %cst_43 = arith.constant dense<0.000000e+00> : vector<8x128xf32>
    %78 = tpu.matmul %76, %77, %cst_43 {dimension_numbers = #tpu.dot_dimension_numbers<[1], [0], [0], [1], [0, 0, 1, 1], [], []>} : vector<8x256xbf16>, vector<256x128xbf16>, vector<8x128xf32> -> vector<8x128xf32>
    %c0_44 = arith.constant 0 : index
    %c0_45 = arith.constant 0 : index
    %79 = vector.load %arg15[%c0_44, %c0_45] : memref<1x128xf32, #tpu.memory_space<vmem>>, vector<1x128xf32>
    %80 = vector.broadcast %79 : vector<1x128xf32> to vector<8x128xf32>
    %81 = arith.addf %78, %80 : vector<8x128xf32>
    %c0_46 = arith.constant 0 : index
    %c0_47 = arith.constant 0 : index
    %82 = vector.load %arg16[%c0_46, %c0_47] : memref<8x128xf32, #tpu.memory_space<vmem>>, vector<8x128xf32>
    tpu.vector_store %arg16[%c0_46, %c0_47], %81 {strides = array<i32>} : memref<8x128xf32, #tpu.memory_space<vmem>>, vector<8x128xf32>,
    return
  }
  func.func @transform_0(%arg0: i32) -> (i32, i32) {
    %c0_i32 = arith.constant 0 : i32
    %c0_i32_0 = arith.constant 0 : i32
    return %arg0, %c0_i32 : i32, i32
  }
  func.func @transform_1(%arg0: i32) -> (i32, i32) {
    %c0_i32 = arith.constant 0 : i32
    %c0_i32_0 = arith.constant 0 : i32
    return %arg0, %c0_i32 : i32, i32
  }
  func.func @transform_2(%arg0: i32) -> (i32, i32) {
    %c0_i32 = arith.constant 0 : i32
    %c0_i32_0 = arith.constant 0 : i32
    %c0_i32_1 = arith.constant 0 : i32
    return %c0_i32, %c0_i32_0 : i32, i32
  }
  func.func @transform_3(%arg0: i32) -> (i32, i32) {
    %c0_i32 = arith.constant 0 : i32
    %c0_i32_0 = arith.constant 0 : i32
    %c0_i32_1 = arith.constant 0 : i32
    return %c0_i32, %c0_i32_0 : i32, i32
  }
  func.func @transform_4(%arg0: i32) -> (i32, i32) {
    %c0_i32 = arith.constant 0 : i32
    %c0_i32_0 = arith.constant 0 : i32
    %c0_i32_1 = arith.constant 0 : i32
    return %c0_i32, %c0_i32_0 : i32, i32
  }
  func.func @transform_5(%arg0: i32) -> (i32, i32) {
    %c0_i32 = arith.constant 0 : i32
    %c0_i32_0 = arith.constant 0 : i32
    %c0_i32_1 = arith.constant 0 : i32
    return %c0_i32, %c0_i32_0 : i32, i32
  }
  func.func @transform_6(%arg0: i32) -> (i32, i32) {
    %c0_i32 = arith.constant 0 : i32
    %c0_i32_0 = arith.constant 0 : i32
    %c0_i32_1 = arith.constant 0 : i32
    return %c0_i32, %c0_i32_0 : i32, i32
  }
  func.func @transform_7(%arg0: i32) -> (i32, i32) {
    %c0_i32 = arith.constant 0 : i32
    %c0_i32_0 = arith.constant 0 : i32
    %c0_i32_1 = arith.constant 0 : i32
    return %c0_i32, %c0_i32_0 : i32, i32
  }
  func.func @transform_8(%arg0: i32) -> (i32, i32) {
    %c0_i32 = arith.constant 0 : i32
    %c0_i32_0 = arith.constant 0 : i32
    %c0_i32_1 = arith.constant 0 : i32
    return %c0_i32, %c0_i32_0 : i32, i32
  }
  func.func @transform_9(%arg0: i32) -> (i32, i32) {
    %c0_i32 = arith.constant 0 : i32
    %c0_i32_0 = arith.constant 0 : i32
    %c0_i32_1 = arith.constant 0 : i32
    return %c0_i32, %c0_i32_0 : i32, i32
  }
  func.func @transform_10(%arg0: i32) -> (i32, i32) {
    %c0_i32 = arith.constant 0 : i32
    %c0_i32_0 = arith.constant 0 : i32
    %c0_i32_1 = arith.constant 0 : i32
    return %c0_i32, %c0_i32_0 : i32, i32
  }
  func.func @transform_11(%arg0: i32) -> (i32, i32) {
    %c0_i32 = arith.constant 0 : i32
    %c0_i32_0 = arith.constant 0 : i32
    %c0_i32_1 = arith.constant 0 : i32
    return %c0_i32, %c0_i32_0 : i32, i32
  }
  func.func @transform_12(%arg0: i32) -> (i32, i32) {
    %c0_i32 = arith.constant 0 : i32
    %c0_i32_0 = arith.constant 0 : i32
    %c0_i32_1 = arith.constant 0 : i32
    return %c0_i32, %c0_i32_0 : i32, i32
  }
  func.func @transform_13(%arg0: i32) -> (i32, i32) {
    %c0_i32 = arith.constant 0 : i32
    %c0_i32_0 = arith.constant 0 : i32
    %c0_i32_1 = arith.constant 0 : i32
    return %c0_i32, %c0_i32_0 : i32, i32
  }
  func.func @transform_14(%arg0: i32) -> (i32, i32) {
    %c0_i32 = arith.constant 0 : i32
    %c0_i32_0 = arith.constant 0 : i32
    %c0_i32_1 = arith.constant 0 : i32
    return %c0_i32, %c0_i32_0 : i32, i32
  }
  func.func @transform_15(%arg0: i32) -> (i32, i32) {
    %c0_i32 = arith.constant 0 : i32
    %c0_i32_0 = arith.constant 0 : i32
    return %arg0, %c0_i32 : i32, i32
  }
  func.func @transform_16(%arg0: i32) -> (i32, i32) {
    %c0_i32 = arith.constant 0 : i32
    %c0_i32_0 = arith.constant 0 : i32
    return %arg0, %c0_i32 : i32, i32
  }
  func.func @transform_17(%arg0: i32) -> (i32, i32) {
    %c0_i32 = arith.constant 0 : i32
    %c0_i32_0 = arith.constant 0 : i32
    return %arg0, %c0_i32 : i32, i32
  }
}

</mosaic_0001>

<bundles_post_ra>
// kernel: tpu_custom_call.1
= control target key start
LH: loop header
LB: loop body
LE: loop exit
PB: predicated region body
PF: predicated region fallthrough
CT: control target
= control target key end

     0   :  { %s3608_s0 = inlined_call_operand.vmem [shape: f32[8,512], index: 0, kind: input, shape index: {}]   ;;  %s3609_s1 = inlined_call_operand.vmem [shape: f32[8,1024], index: 1, kind: input, shape index: {}]   ;;  %s3610_s2 = inlined_call_operand.hbm [shape: bf16[512,256], index: 2, kind: input, shape index: {}]   ;;  %s3611_s3 = inlined_call_operand.vmem [shape: f32[1,256], index: 3, kind: input, shape index: {}]   ;;  %s3612_s4 = inlined_call_operand.hbm [shape: bf16[1024,256], index: 4, kind: input, shape index: {}]   ;;  %s3613_s5 = inlined_call_operand.vmem [shape: f32[1,256], index: 5, kind: input, shape index: {}]   ;;  %s3614_s6 = inlined_call_operand.vmem [shape: bf16[256,64], index: 6, kind: input, shape index: {}]   ;;  %s3615_s7 = inlined_call_operand.vmem [shape: bf16[256,64], index: 7, kind: input, shape index: {}]   ;;  %s3616_s8 = inlined_call_operand.vmem [shape: f32[1,64], index: 8, kind: input, shape index: {}]   ;;  %s3617_s9 = inlined_call_operand.vmem [shape: bf16[64,32], index: 9, kind: input, shape index: {}]   ;;  %s3618_s10 = inlined_call_operand.vmem [shape: f32[1,32], index: 10, kind: input, shape index: {}]   ;;  %s3619_s11 = inlined_call_operand.vmem [shape: f32[32,2], index: 11, kind: input, shape index: {}]   ;;  %s3620_s12 = inlined_call_operand.vmem [shape: f32[1,2], index: 12, kind: input, shape index: {}]   ;;  %s3621_s13 = inlined_call_operand.vmem [shape: bf16[256,128], index: 13, kind: input, shape index: {}]   ;;  %s3622_s14 = inlined_call_operand.vmem [shape: f32[1,128], index: 14, kind: input, shape index: {}]   ;;  %s3623_s15 = inlined_call_operand.hbm [shape: f32[8,128], index: 15, kind: output, shape index: {0}]   ;;  %s3624_s16 = inlined_call_operand.hbm [shape: f32[8,128], index: 16, kind: output, shape index: {1}]   ;;  %s3625_s17 = inlined_call_operand.hbm [shape: f32[8,512], index: 17, kind: output, shape index: {2}]  }
   0x1   :  { %3628 = sst [smem:[#allocation15_spill]] %s3608_s0 }
   0x2   :  { %3629 = sst [smem:[#allocation16_spill]] %s3609_s1 }
   0x3   :  { %23 = vsyncpa [#allocation3], 0 }
   0x4   :  { %24 = vsyncpa [#allocation6], 0 }
   0x5   :  { %25 = vsyncpa [#allocation4], 0 }
   0x6   :  { %26 = vsyncpa [#allocation9], 0  ;;  %s3194_s24 = smov [#allocation2]   ;;  %s3076_s28 = scalar_lea.hbm %s3610_s2, 8192 }
   0x7   :  { %s36_s25 = sshll.u32 %s3194_s24, 4  ;;  %p3077_p0 = scmp.ne.s32.totalorder %s3610_s2, %s3076_s28  ;;  %s37_s25 = int_to_ptr.vmem [resolvable:$true] %s36_s25 }
   0x8   :  { %p3080_p1 = scmp.lt.u32.totalorder %s3076_s28, %s3610_s2 }
   0xa   :  { %p3082_p2 = pnand %p3080_p1, %p3077_p0 }
   0xc   :  { %3085 = shalt.err (!%p3082_p2)
}
   0xd   :  { %s3086_s19 = scalar_lea.vmem %s37_s25, 8192  ;;  %p3091_p4 = scmp.lt.s32.totalorder %s37_s25, %s37_s25 }
   0xe   :  { %p3087_p3 = scmp.ne.s32.totalorder %s37_s25, %s3086_s19  ;;  %p3092_p5 = scmp.lt.s32.totalorder %s3086_s19, %s3086_s19 }
  0x10   :  { %p3093_p6 = por %p3092_p5, %p3091_p4 }
  0x12   :  { %p3094_p7 = pnand %p3093_p6, %p3087_p3 }
  0x14   :  { %3097 = shalt.err (!%p3094_p7)
}
  0x15   :  { %s3195_s1 = smov 128   ;;  %s3196_s20 = smov 8  }
  0x16   :  { %42 = dma.hbm_to_vmem [thread:$0]  %s3610_s2, 8192, %s37_s25, [#allocation3], %s3195_s1, %s3195_s1, %s3196_s20  }
  0x17   :  { %s3197_s23 = smov [#allocation5]   ;;  %s3098_s28 = scalar_lea.hbm %s3612_s4, 16384 }
  0x18   :  { %s50_s24 = sshll.u32 %s3197_s23, 4  ;;  %p3099_p8 = scmp.ne.s32.totalorder %s3612_s4, %s3098_s28  ;;  %s51_s24 = int_to_ptr.vmem [resolvable:$true] %s50_s24 }
  0x19   :  { %p3102_p9 = scmp.lt.u32.totalorder %s3098_s28, %s3612_s4 }
  0x1b   :  { %p3104_p10 = pnand %p3102_p9, %p3099_p8 }
  0x1d   :  { %3107 = shalt.err (!%p3104_p10)
}
  0x1e   :  { %s3108_s19 = scalar_lea.vmem %s51_s24, 16384  ;;  %p3113_p12 = scmp.lt.s32.totalorder %s51_s24, %s51_s24 }
  0x1f   :  { %p3109_p11 = scmp.ne.s32.totalorder %s51_s24, %s3108_s19  ;;  %p3114_p13 = scmp.lt.s32.totalorder %s3108_s19, %s3108_s19 }
  0x21   :  { %p3115_p0 = por %p3114_p13, %p3113_p12 }
  0x23   :  { %p3116_p1 = pnand %p3115_p0, %p3109_p11 }
  0x25   :  { %3119 = shalt.err (!%p3116_p1)
}
  0x26   :  { %56 = dma.hbm_to_vmem [thread:$0]  %s3612_s4, 16384, %s51_s24, [#allocation6], %s3195_s1, %s3195_s1, %s3196_s20  }
  0x27   :  { %3186 = dma.done.wait [#allocation3], 8192  }
  0x28   :  { %3187 = vsyncadd [#allocation3], 4294959104 }
  0x29   :  { %3188 = dma.done.wait [#allocation6], 16384  }
  0x2a   :  { %3189 = vsyncadd [#allocation6], 4294950912  ;;  %v2730_v0 = vld [vmem:[#allocation5 + $0x4] ss:$8 sps:$4 sm:$0xff]   ;;  %v2732_v1 = vld [vmem:[#allocation5] ss:$8 sps:$4 sm:$0xff]  }
  0x2b   :  { %1378 = vmatprep.subr.bf16.mxu1 %v2730_v0  ;;  %v2733_v2 = vld [vmem:[#allocation5 + $0x14] ss:$8 sps:$4 sm:$0xff]   ;;  %v2735_v3 = vld [vmem:[#allocation5 + $0x10] ss:$8 sps:$4 sm:$0xff]   ;;  %v2736_v4 = vld [vmem:[#allocation5 + $0x24] ss:$8 sps:$4 sm:$0xff]  }
  0x2c   :  { %1379 = vmatpush1.bf16.msra.mxu1 %v2732_v1  ;;  %v2738_v5 = vld [vmem:[#allocation5 + $0x20] ss:$8 sps:$4 sm:$0xff]   ;;  %v2739_v6 = vld [vmem:[#allocation5 + $0x34] ss:$8 sps:$4 sm:$0xff]   ;;  %v2741_v7 = vld [vmem:[#allocation5 + $0x30] ss:$8 sps:$4 sm:$0xff]  }
  0x2d   :  { %1380 = vmatprep.subr.bf16.mxu1 %v2733_v2  ;;  %v2742_v8 = vld [vmem:[#allocation5 + $0x44] ss:$8 sps:$4 sm:$0xff]   ;;  %v2744_v9 = vld [vmem:[#allocation5 + $0x40] ss:$8 sps:$4 sm:$0xff]   ;;  %v2745_v10 = vld [vmem:[#allocation5 + $0x54] ss:$8 sps:$4 sm:$0xff]  }
  0x2e   :  { %v2747_v11 = vld [vmem:[#allocation5 + $0x50] ss:$8 sps:$4 sm:$0xff]   ;;  %v2748_v12 = vld [vmem:[#allocation5 + $0x64] ss:$8 sps:$4 sm:$0xff]   ;;  %s3630_s20 = sld [smem:[#allocation16_spill]]  ;;  %s3631_s28 = sld [smem:[#allocation15_spill]] }
  0x2f   :  { %v2750_v15 = vld [vmem:[#allocation5 + $0x60] ss:$8 sps:$4 sm:$0xff]   ;;  %v2751_v16 = vld [vmem:[#allocation5 + $0x74] ss:$8 sps:$4 sm:$0xff]   ;;  %v2753_v18 = vld [vmem:[#allocation5 + $0x70] ss:$8 sps:$4 sm:$0xff]  }
  0x30   :  { %1381 = vmatpush1.bf16.msra.mxu1 %v2735_v3  ;;  %v2754_v19 = vld [vmem:[#allocation5 + $0x84] ss:$8 sps:$4 sm:$0xff]   ;;  %v2756_v20 = vld [vmem:[#allocation5 + $0x80] ss:$8 sps:$4 sm:$0xff]   ;;  %v2757_v21 = vld [vmem:[#allocation5 + $0x94] ss:$8 sps:$4 sm:$0xff]  }
  0x31   :  { %1382 = vmatprep.subr.bf16.mxu1 %v2736_v4  ;;  %v2802_v22 = vld [vmem:[#allocation2 + $0x4] ss:$8 sps:$4 sm:$0xff]   ;;  %v2804_v23 = vld [vmem:[#allocation2] ss:$8 sps:$4 sm:$0xff]   ;;  %v2759_v24 = vld [vmem:[#allocation5 + $0x90] ss:$8 sps:$4 sm:$0xff]  }
  0x32   :  { %v2760_v25 = vld [vmem:[#allocation5 + $0xa4] ss:$8 sps:$4 sm:$0xff]   ;;  %508 = vmatprep.subr.bf16.mxu0 %v2802_v22  ;;  %v2808_v26 = vld [vmem:[#allocation2 + $0x14] ss:$8 sps:$4 sm:$0xff]   ;;  %v2810_v27 = vld [vmem:[#allocation2 + $0x10] ss:$8 sps:$4 sm:$0xff]  }
  0x33   :  { %509 = vmatpush1.bf16.msra.mxu0 %v2804_v23  ;;  %v2814_v28 = vld [vmem:[#allocation2 + $0x24] ss:$8 sps:$4 sm:$0xff]   ;;  %v2762_v29 = vld [vmem:[#allocation5 + $0xa0] ss:$8 sps:$4 sm:$0xff]   ;;  %v2763_v30 = vld [vmem:[#allocation5 + $0xb4] ss:$8 sps:$4 sm:$0xff]  }
  0x34   :  { %1383 = vmatpush1.bf16.msra.mxu1 %v2738_v5  ;;  %v93_v13 = vld [vmem:[%s3630_s20 + $0x8] sm:$0xff]  ;;  %510 = vmatprep.subr.bf16.mxu0 %v2808_v26  ;;  %v2820_v32 = vld [vmem:[#allocation2 + $0x34] ss:$8 sps:$4 sm:$0xff]   ;;  %v2765_v33 = vld [vmem:[#allocation5 + $0xb0] ss:$8 sps:$4 sm:$0xff]   ;;  %vm3199_vm0 = vmmov 0  }
  0x35   :  { %1384 = vmatprep.subr.bf16.mxu1 %v2739_v6  ;;  %v101_v14 = vmax.f32 %v93_v13, 0.0  ;;  %v2816_v31 = vld [vmem:[#allocation2 + $0x20] ss:$8 sps:$4 sm:$0xff]   ;;  %v2766_v34 = vld [vmem:[#allocation5 + $0xc4] ss:$8 sps:$4 sm:$0xff]   ;;  %v95_v49 = vld [vmem:[%s3630_s20 + $0x18] sm:$0xff] }
  0x36   :  { %v2822_v35 = vld [vmem:[#allocation2 + $0x30] ss:$8 sps:$4 sm:$0xff]   ;;  %v2826_v36 = vld [vmem:[#allocation2 + $0x44] ss:$8 sps:$4 sm:$0xff]   ;;  %v2768_v37 = vld [vmem:[#allocation5 + $0xc0] ss:$8 sps:$4 sm:$0xff]  }
  0x37   :  { %v591_v17 = vpack.c.bf16 %v101_v14, %v101_v14  ;;  %511 = vmatpush1.bf16.msra.mxu0 %v2810_v27  ;;  %v2769_v38 = vld [vmem:[#allocation5 + $0xd4] ss:$8 sps:$4 sm:$0xff]   ;;  %v2828_v39 = vld [vmem:[#allocation2 + $0x40] ss:$8 sps:$4 sm:$0xff]   ;;  %v2771_v41 = vld [vmem:[#allocation5 + $0xd0] ss:$8 sps:$4 sm:$0xff]  }
  0x38   :  { %1385 = vmatpush1.bf16.msra.mxu1 %v2741_v7  ;;  %512 = vmatprep.subr.bf16.mxu0 %v2814_v28  ;;  %v2832_v40 = vld [vmem:[#allocation2 + $0x54] ss:$8 sps:$4 sm:$0xff]   ;;  %v2772_v42 = vld [vmem:[#allocation5 + $0xe4] ss:$8 sps:$4 sm:$0xff]   ;;  %v2834_v43 = vld [vmem:[#allocation2 + $0x50] ss:$8 sps:$4 sm:$0xff]  }
  0x39   :  { %1386 = vmatprep.subr.bf16.mxu1 %v2742_v8  ;;  %1410 = vmatprep.mubr.bf16.mxu1 %v591_v17  ;;  %v2838_v44 = vld [vmem:[#allocation2 + $0x64] ss:$8 sps:$4 sm:$0xff]   ;;  %v2774_v45 = vld [vmem:[#allocation5 + $0xe0] ss:$8 sps:$4 sm:$0xff]   ;;  %v2775_v46 = vld [vmem:[#allocation5 + $0xf4] ss:$8 sps:$4 sm:$0xff]  }
  0x3a   :  { %v92_v47 = vld [vmem:[%s3630_s20] sm:$0xff]  ;;  %v2844_v50 = vld [vmem:[#allocation2 + $0x74] ss:$8 sps:$4 sm:$0xff]   ;;  %v2777_v52 = vld [vmem:[#allocation5 + $0xf0] ss:$8 sps:$4 sm:$0xff]   ;;  %v103_v54 = vmax.f32 %v95_v49, 0.0 }
  0x3b   :  { %513 = vmatpush1.bf16.msra.mxu0 %v2816_v31  ;;  %v2840_v48 = vld [vmem:[#allocation2 + $0x60] ss:$8 sps:$4 sm:$0xff]   ;;  %v100_v51 = vmax.f32 %v92_v47, 0.0  ;;  %v2780_v53 = vld [vmem:[#allocation5 + $0x104] ss:$8 sps:$4 sm:$0xff]   ;;  %vm1935_vm1 = vcmask 523264  }
  0x3c   :  { %1387 = vmatpush1.bf16.msra.mxu1 %v2744_v9  ;;  %514 = vmatprep.subr.bf16.mxu0 %v2820_v32  ;;  %v2846_v55 = vld [vmem:[#allocation2 + $0x70] ss:$8 sps:$4 sm:$0xff]   ;;  %v2850_v56 = vld [vmem:[#allocation2 + $0x84] ss:$8 sps:$4 sm:$0xff]   ;;  %v2778_v58 = vld [vmem:[#allocation5 + $0x100] ss:$8 sps:$4 sm:$0xff]   ;;  %v593_v60 = vpack.c.bf16 %v103_v54, %v103_v54 }
  0x3d   :  { %1388 = vmatprep.subr.bf16.mxu1 %v2745_v10  ;;  %v590_v57 = vpack.c.bf16 %v100_v51, %v100_v51  ;;  %v2783_v59 = vld [vmem:[#allocation5 + $0x114] ss:$8 sps:$4 sm:$0xff]   ;;  %v2852_v61 = vld [vmem:[#allocation2 + $0x80] ss:$8 sps:$4 sm:$0xff]   ;;  %v2781_v63 = vld [vmem:[#allocation5 + $0x110] ss:$8 sps:$4 sm:$0xff]  }
  0x3e   :  { %v2856_v62 = vld [vmem:[#allocation2 + $0x94] ss:$8 sps:$4 sm:$0xff]   ;;  %v2786_v0 = vld [vmem:[#allocation5 + $0x124] ss:$8 sps:$4 sm:$0xff]   ;;  %v2858_v1 = vld [vmem:[#allocation2 + $0x90] ss:$8 sps:$4 sm:$0xff]  }
  0x3f   :  { %515 = vmatpush1.bf16.msra.mxu0 %v2822_v35  ;;  %v2862_v2 = vld [vmem:[#allocation2 + $0xa4] ss:$8 sps:$4 sm:$0xff]   ;;  %v2784_v3 = vld [vmem:[#allocation5 + $0x120] ss:$8 sps:$4 sm:$0xff]   ;;  %v2789_v4 = vld [vmem:[#allocation5 + $0x134] ss:$8 sps:$4 sm:$0xff]  }
  0x40   :  { %1389 = vmatpush1.bf16.msra.mxu1 %v2747_v11  ;;  %516 = vmatprep.subr.bf16.mxu0 %v2826_v36  ;;  %v2864_v5 = vld [vmem:[#allocation2 + $0xa0] ss:$8 sps:$4 sm:$0xff]   ;;  %v2868_v6 = vld [vmem:[#allocation2 + $0xb4] ss:$8 sps:$4 sm:$0xff]   ;;  %v2787_v7 = vld [vmem:[#allocation5 + $0x130] ss:$8 sps:$4 sm:$0xff]  }
  0x41   :  { %1390 = vmatprep.subr.bf16.mxu1 %v2748_v12  ;;  %v2792_v8 = vld [vmem:[#allocation5 + $0x144] ss:$8 sps:$4 sm:$0xff]   ;;  %v2870_v9 = vld [vmem:[#allocation2 + $0xb0] ss:$8 sps:$4 sm:$0xff]   ;;  %v2790_v13 = vld [vmem:[#allocation5 + $0x140] ss:$8 sps:$4 sm:$0xff]  }
  0x42   :  { %v85_v10 = vld [vmem:[%s3631_s28 + $0x8] sm:$0xff]  ;;  %v2880_v17 = vld [vmem:[#allocation2 + $0xd4] ss:$8 sps:$4 sm:$0xff]   ;;  %v2799_v27 = vld [vmem:[#allocation5 + $0x170] ss:$8 sps:$4 sm:$0xff]   ;;  %vm1991_vm2 = vcmask 261120  }
  0x43   :  { %517 = vmatpush1.bf16.msra.mxu0 %v2828_v39  ;;  %v2874_v11 = vld [vmem:[#allocation2 + $0xc4] ss:$8 sps:$4 sm:$0xff]   ;;  %v89_v12 = vmax.f32 %v85_v10, 0.0  ;;  %v2796_v22 = vld [vmem:[#allocation5 + $0x160] ss:$8 sps:$4 sm:$0xff]  }
  0x44   :  { %1391 = vmatpush1.bf16.msra.mxu1 %v2750_v15  ;;  %518 = vmatprep.subr.bf16.mxu0 %v2832_v40  ;;  %v2795_v15 = vld [vmem:[#allocation5 + $0x154] ss:$8 sps:$4 sm:$0xff]   ;;  %v2900_v31 = vld [vmem:[#allocation2 + $0x104] ss:$8 sps:$4 sm:$0xff]   ;;  %v2805_v32 = vld [vmem:[#allocation5 + $0x180] ss:$8 sps:$4 sm:$0xff]  }
  0x45   :  { %1392 = vmatprep.subr.bf16.mxu1 %v2751_v16  ;;  %v109_v14 = vpack.c.bf16 %v89_v12, %v89_v12  ;;  %v2876_v16 = vld [vmem:[#allocation2 + $0xc0] ss:$8 sps:$4 sm:$0xff]   ;;  %v2801_v23 = vld [vmem:[#allocation5 + $0x174] ss:$8 sps:$4 sm:$0xff]   ;;  %v2904_v39 = vld [vmem:[#allocation2 + $0x110] ss:$8 sps:$4 sm:$0xff]  }
  0x46   :  { %v2892_v26 = vld [vmem:[#allocation2 + $0xf4] ss:$8 sps:$4 sm:$0xff]   ;;  %v2898_v35 = vld [vmem:[#allocation2 + $0x100] ss:$8 sps:$4 sm:$0xff]   ;;  %v2912_v40 = vld [vmem:[#allocation2 + $0x124] ss:$8 sps:$4 sm:$0xff]  }
  0x47   :  { %519 = vmatpush1.bf16.msra.mxu0 %v2834_v43  ;;  %540 = vmatprep.mubr.bf16.mxu0 %v109_v14  ;;  %v2906_v36 = vld [vmem:[#allocation2 + $0x114] ss:$8 sps:$4 sm:$0xff]   ;;  %v2910_v43 = vld [vmem:[#allocation2 + $0x120] ss:$8 sps:$4 sm:$0xff]   ;;  %v2916_v47 = vld [vmem:[#allocation2 + $0x130] ss:$8 sps:$4 sm:$0xff]  }
  0x48   :  { %1393 = vmatpush1.bf16.msra.mxu1 %v2753_v18  ;;  %520 = vmatprep.subr.bf16.mxu0 %v2838_v44  ;;  %v2793_v18 = vld [vmem:[#allocation5 + $0x150] ss:$8 sps:$4 sm:$0xff]   ;;  %v2918_v44 = vld [vmem:[#allocation2 + $0x134] ss:$8 sps:$4 sm:$0xff]   ;;  %v2829_v49 = vld [vmem:[#allocation5 + $0x1c0] ss:$8 sps:$4 sm:$0xff]  }
  0x49   :  { %1394 = vmatprep.subr.bf16.mxu1 %v2754_v19  ;;  %v2798_v19 = vld [vmem:[#allocation5 + $0x164] ss:$8 sps:$4 sm:$0xff]   ;;  %v2922_v51 = vld [vmem:[#allocation2 + $0x140] ss:$8 sps:$4 sm:$0xff]   ;;  %v2859_v14 = vld [vmem:[#allocation5 + $0x210] ss:$8 sps:$4 sm:$0xff]  }
  0x4a   :  { %v2843_v54 = vld [vmem:[#allocation5 + $0x1e4] ss:$8 sps:$4 sm:$0xff]   ;;  %v2946_v12 = vld [vmem:[#allocation2 + $0x180] ss:$8 sps:$4 sm:$0xff]  }
  0x4b   :  { %521 = vmatpush1.bf16.msra.mxu0 %v2840_v48  ;;  %v2924_v48 = vld [vmem:[#allocation2 + $0x144] ss:$8 sps:$4 sm:$0xff]  }
  0x4c   :  { %1395 = vmatpush1.bf16.msra.mxu1 %v2756_v20  ;;  %522 = vmatprep.subr.bf16.mxu0 %v2844_v50  ;;  %v2882_v20 = vld [vmem:[#allocation2 + $0xd0] ss:$8 sps:$4 sm:$0xff]   ;;  %v2837_v50 = vld [vmem:[#allocation5 + $0x1d4] ss:$8 sps:$4 sm:$0xff]  }
  0x4d   :  { %1396 = vmatprep.subr.bf16.mxu1 %v2757_v21  ;;  %v2886_v21 = vld [vmem:[#allocation2 + $0xe4] ss:$8 sps:$4 sm:$0xff]  }
  0x4f   :  { %523 = vmatpush1.bf16.msra.mxu0 %v2846_v55  ;;  %v2928_v55 = vld [vmem:[#allocation2 + $0x150] ss:$8 sps:$4 sm:$0xff]  }
  0x50   :  { %1397 = vmatpush1.bf16.msra.mxu1 %v2759_v24  ;;  %524 = vmatprep.subr.bf16.mxu0 %v2850_v56  ;;  %v2888_v24 = vld [vmem:[#allocation2 + $0xe0] ss:$8 sps:$4 sm:$0xff]   ;;  %v2936_v56 = vld [vmem:[#allocation2 + $0x164] ss:$8 sps:$4 sm:$0xff]  }
  0x51   :  { %1398 = vmatprep.subr.bf16.mxu1 %v2760_v25  ;;  %v84_v25 = vld [vmem:[%s3631_s28] sm:$0xff] }
  0x52   :  { %v88_v28 = vmax.f32 %v84_v25, 0.0  ;;  %v2879_v25 = vld [vmem:[#allocation5 + $0x244] ss:$8 sps:$4 sm:$0xff]  }
  0x53   :  { %525 = vmatpush1.bf16.msra.mxu0 %v2852_v61 }
  0x54   :  { %1399 = vmatpush1.bf16.msra.mxu1 %v2762_v29  ;;  %526 = vmatprep.subr.bf16.mxu0 %v2856_v62  ;;  %v2807_v29 = vld [vmem:[#allocation5 + $0x184] ss:$8 sps:$4 sm:$0xff]   ;;  %v2934_v62 = vld [vmem:[#allocation2 + $0x160] ss:$8 sps:$4 sm:$0xff]  }
  0x55   :  { %1400 = vmatprep.subr.bf16.mxu1 %v2763_v30  ;;  %v2894_v30 = vld [vmem:[#allocation2 + $0xf0] ss:$8 sps:$4 sm:$0xff]  }
  0x57   :  { %527 = vmatpush1.bf16.msra.mxu0 %v2858_v1 }
  0x58   :  { %1401 = vmatpush1.bf16.msra.mxu1 %v2765_v33  ;;  %528 = vmatprep.subr.bf16.mxu0 %v2862_v2  ;;  %v108_v33 = vpack.c.bf16 %v88_v28, %v88_v28  ;;  %v2877_v28 = vld [vmem:[#allocation5 + $0x240] ss:$8 sps:$4 sm:$0xff]  }
  0x59   :  { %1402 = vmatprep.subr.bf16.mxu1 %v2766_v34  ;;  %v2813_v34 = vld [vmem:[#allocation5 + $0x194] ss:$8 sps:$4 sm:$0xff]  }
  0x5b   :  { %529 = vmatpush1.bf16.msra.mxu0 %v2864_v5  ;;  %v2855_v5 = vld [vmem:[#allocation5 + $0x204] ss:$8 sps:$4 sm:$0xff]  }
  0x5c   :  { %1403 = vmatpush1.bf16.msra.mxu1 %v2768_v37  ;;  %530 = vmatprep.subr.bf16.mxu0 %v2868_v6  ;;  %v2811_v37 = vld [vmem:[#allocation5 + $0x190] ss:$8 sps:$4 sm:$0xff]  }
  0x5d   :  { %1404 = vmatprep.subr.bf16.mxu1 %v2769_v38  ;;  %v2819_v38 = vld [vmem:[#allocation5 + $0x1a4] ss:$8 sps:$4 sm:$0xff]   ;;  %v2940_v6 = vld [vmem:[#allocation2 + $0x170] ss:$8 sps:$4 sm:$0xff]  }
  0x5f   :  { %531 = vmatpush1.bf16.msra.mxu0 %v2870_v9  ;;  %v2853_v9 = vld [vmem:[#allocation5 + $0x200] ss:$8 sps:$4 sm:$0xff]  }
  0x60   :  { %1405 = vmatpush1.bf16.msra.mxu1 %v2771_v41  ;;  %532 = vmatprep.subr.bf16.mxu0 %v2874_v11  ;;  %v2817_v41 = vld [vmem:[#allocation5 + $0x1a0] ss:$8 sps:$4 sm:$0xff]   ;;  %v2861_v11 = vld [vmem:[#allocation5 + $0x214] ss:$8 sps:$4 sm:$0xff]  }
  0x61   :  { %1406 = vmatprep.subr.bf16.mxu1 %v2772_v42  ;;  %v2825_v42 = vld [vmem:[#allocation5 + $0x1b4] ss:$8 sps:$4 sm:$0xff]  }
  0x63   :  { %533 = vmatpush1.bf16.msra.mxu0 %v2876_v16  ;;  %v2867_v16 = vld [vmem:[#allocation5 + $0x224] ss:$8 sps:$4 sm:$0xff]  }
  0x64   :  { %1407 = vmatpush1.bf16.msra.mxu1 %v2774_v45  ;;  %534 = vmatprep.subr.bf16.mxu0 %v2880_v17  ;;  %v2823_v45 = vld [vmem:[#allocation5 + $0x1b0] ss:$8 sps:$4 sm:$0xff]  }
  0x65   :  { %1408 = vmatprep.subr.bf16.mxu1 %v2775_v46  ;;  %v2831_v46 = vld [vmem:[#allocation5 + $0x1c4] ss:$8 sps:$4 sm:$0xff]   ;;  %v2952_v17 = vld [vmem:[#allocation2 + $0x190] ss:$8 sps:$4 sm:$0xff]  }
  0x67   :  { %535 = vmatpush1.bf16.msra.mxu0 %v2882_v20  ;;  %v2873_v20 = vld [vmem:[#allocation5 + $0x234] ss:$8 sps:$4 sm:$0xff]  }
  0x68   :  { %1409 = vmatpush1.bf16.msra.mxu1 %v2777_v52  ;;  %536 = vmatprep.subr.bf16.mxu0 %v2886_v21  ;;  %v2930_v52 = vld [vmem:[#allocation2 + $0x154] ss:$8 sps:$4 sm:$0xff]   ;;  %v2958_v21 = vld [vmem:[#allocation2 + $0x1a0] ss:$8 sps:$4 sm:$0xff]  }
  0x69   :  { %1419 = vmatprep.subr.bf16.mxu1 %v2780_v53  ;;  %v2835_v53 = vld [vmem:[#allocation5 + $0x1d0] ss:$8 sps:$4 sm:$0xff]  }
  0x6b   :  { %1411 = vmatmul.mubr.bf16.vlgmr.msra.gmra.mrb[0].mxu1 %v590_v57  ;;  %537 = vmatpush1.bf16.msra.mxu0 %v2888_v24  ;;  %v2841_v57 = vld [vmem:[#allocation5 + $0x1e0] ss:$8 sps:$4 sm:$0xff]   ;;  %v2871_v24 = vld [vmem:[#allocation5 + $0x230] ss:$8 sps:$4 sm:$0xff]  }
  0x6c   :  { %1420 = vmatpush1.bf16.msra.mxu1 %v2778_v58  ;;  %1451 = vmatprep.mubr.bf16.mxu1 %v593_v60  ;;  %v2849_v58 = vld [vmem:[#allocation5 + $0x1f4] ss:$8 sps:$4 sm:$0xff]  }
  0x6d   :  { %1421 = vmatprep.subr.bf16.mxu1 %v2783_v59  ;;  %538 = vmatprep.subr.bf16.mxu0 %v2892_v26  ;;  %v87_v59 = vld [vmem:[%s3631_s28 + $0x18] sm:$0xff]  ;;  %v94_v60 = vld [vmem:[%s3630_s20 + $0x10] sm:$0xff] }
  0x6e   :  { %v91_v61 = vmax.f32 %v87_v59, 0.0  ;;  %v102_v2 = vmax.f32 %v94_v60, 0.0  ;;  %v2964_v26 = vld [vmem:[#allocation2 + $0x1b0] ss:$8 sps:$4 sm:$0xff]  }
  0x6f   :  { %539 = vmatpush1.bf16.msra.mxu0 %v2894_v30  ;;  %v2970_v30 = vld [vmem:[#allocation2 + $0x1c0] ss:$8 sps:$4 sm:$0xff]   ;;  %v99_v59 = vld [vmem:[%s3630_s20 + $0x38] sm:$0xff] }
  0x70   :  { %1422 = vmatpush1.bf16.msra.mxu1 %v2781_v63  ;;  %549 = vmatprep.subr.bf16.mxu0 %v2900_v31  ;;  %v97_v63 = vld [vmem:[%s3630_s20 + $0x28] sm:$0xff]  ;;  %v111_v1 = vpack.c.bf16 %v91_v61, %v91_v61  ;;  %v2978_v31 = vld [vmem:[#allocation2 + $0x1d4] ss:$8 sps:$4 sm:$0xff]   ;;  %v2943_v61 = vld [vmem:[#allocation5 + $0x2f0] ss:$8 sps:$4 sm:$0xff]  }
  0x71   :  { %1423 = vmatprep.subr.bf16.mxu1 %v2786_v0  ;;  %v2942_v0 = vld [vmem:[#allocation2 + $0x174] ss:$8 sps:$4 sm:$0xff]  }
  0x72   :  { %541 = vmatmul.mubr.bf16.vlgmr.msra.gmra.mrb[0].mxu0 %v108_v33  ;;  %v2891_v33 = vld [vmem:[#allocation5 + $0x264] ss:$8 sps:$4 sm:$0xff]  }
  0x73   :  { %550 = vmatpush1.bf16.msra.mxu0 %v2898_v35  ;;  %581 = vmatprep.mubr.bf16.mxu0 %v111_v1  ;;  %v2984_v35 = vld [vmem:[#allocation2 + $0x1e4] ss:$8 sps:$4 sm:$0xff]   ;;  %v2949_v1 = vld [vmem:[#allocation5 + $0x300] ss:$8 sps:$4 sm:$0xff]  }
  0x74   :  { %1424 = vmatpush1.bf16.msra.mxu1 %v2784_v3  ;;  %551 = vmatprep.subr.bf16.mxu0 %v2906_v36  ;;  %v2847_v3 = vld [vmem:[#allocation5 + $0x1f0] ss:$8 sps:$4 sm:$0xff]   ;;  %v2889_v36 = vld [vmem:[#allocation5 + $0x260] ss:$8 sps:$4 sm:$0xff]  }
  0x75   :  { %1425 = vmatprep.subr.bf16.mxu1 %v2789_v4  ;;  %v105_v4 = vmax.f32 %v97_v63, 0.0  ;;  %v2951_v63 = vld [vmem:[#allocation5 + $0x304] ss:$8 sps:$4 sm:$0xff]  }
  0x77   :  { %552 = vmatpush1.bf16.msra.mxu0 %v2904_v39  ;;  %v595_v10 = vpack.c.bf16 %v105_v4, %v105_v4  ;;  %v2990_v39 = vld [vmem:[#allocation2 + $0x1f4] ss:$8 sps:$4 sm:$0xff]   ;;  %v2955_v4 = vld [vmem:[#allocation5 + $0x310] ss:$8 sps:$4 sm:$0xff]  }
  0x78   :  { %1426 = vmatpush1.bf16.msra.mxu1 %v2787_v7  ;;  %553 = vmatprep.subr.bf16.mxu0 %v2912_v40  ;;  %v2948_v7 = vld [vmem:[#allocation2 + $0x184] ss:$8 sps:$4 sm:$0xff]   ;;  %v2895_v40 = vld [vmem:[#allocation5 + $0x270] ss:$8 sps:$4 sm:$0xff]  }
  0x79   :  { %1427 = vmatprep.subr.bf16.mxu1 %v2792_v8  ;;  %v592_v8 = vpack.c.bf16 %v102_v2, %v102_v2 }
  0x7b   :  { %554 = vmatpush1.bf16.msra.mxu0 %v2910_v43  ;;  %v2901_v43 = vld [vmem:[#allocation5 + $0x280] ss:$8 sps:$4 sm:$0xff]  }
  0x7c   :  { %1428 = vmatpush1.bf16.msra.mxu1 %v2790_v13  ;;  %555 = vmatprep.subr.bf16.mxu0 %v2918_v44  ;;  %v2954_v13 = vld [vmem:[#allocation2 + $0x194] ss:$8 sps:$4 sm:$0xff]  }
  0x7d   :  { %1429 = vmatprep.subr.bf16.mxu1 %v2795_v15  ;;  %v86_v15 = vld [vmem:[%s3631_s28 + $0x10] sm:$0xff] }
  0x7e   :  { %v2909_v44 = vld [vmem:[#allocation5 + $0x294] ss:$8 sps:$4 sm:$0xff]  }
  0x7f   :  { %556 = vmatpush1.bf16.msra.mxu0 %v2916_v47  ;;  %v2915_v47 = vld [vmem:[#allocation5 + $0x2a4] ss:$8 sps:$4 sm:$0xff]  }
  0x80   :  { %1430 = vmatpush1.bf16.msra.mxu1 %v2793_v18  ;;  %557 = vmatprep.subr.bf16.mxu0 %v2924_v48  ;;  %v2960_v18 = vld [vmem:[#allocation2 + $0x1a4] ss:$8 sps:$4 sm:$0xff]   ;;  %v2913_v48 = vld [vmem:[#allocation5 + $0x2a0] ss:$8 sps:$4 sm:$0xff]  }
  0x81   :  { %1431 = vmatprep.subr.bf16.mxu1 %v2798_v19  ;;  %v2865_v19 = vld [vmem:[#allocation5 + $0x220] ss:$8 sps:$4 sm:$0xff]  }
  0x83   :  { %558 = vmatpush1.bf16.msra.mxu0 %v2922_v51  ;;  %v2927_v51 = vld [vmem:[#allocation5 + $0x2c4] ss:$8 sps:$4 sm:$0xff]  }
  0x84   :  { %1432 = vmatpush1.bf16.msra.mxu1 %v2796_v22  ;;  %559 = vmatprep.subr.bf16.mxu0 %v2930_v52  ;;  %v90_v22 = vmax.f32 %v86_v15, 0.0  ;;  %v2925_v52 = vld [vmem:[#allocation5 + $0x2c0] ss:$8 sps:$4 sm:$0xff]   ;;  %v2993_v15 = vld [vmem:[#allocation5 + $0x374] ss:$8 sps:$4 sm:$0xff]  }
  0x85   :  { %1433 = vmatprep.subr.bf16.mxu1 %v2801_v23  ;;  %v2966_v23 = vld [vmem:[#allocation2 + $0x1b4] ss:$8 sps:$4 sm:$0xff]  }
  0x87   :  { %560 = vmatpush1.bf16.msra.mxu0 %v2928_v55  ;;  %v2939_v55 = vld [vmem:[#allocation5 + $0x2e4] ss:$8 sps:$4 sm:$0xff]  }
  0x88   :  { %1434 = vmatpush1.bf16.msra.mxu1 %v2799_v27  ;;  %561 = vmatprep.subr.bf16.mxu0 %v2936_v56  ;;  %v2972_v27 = vld [vmem:[#allocation2 + $0x1c4] ss:$8 sps:$4 sm:$0xff]   ;;  %v2937_v56 = vld [vmem:[#allocation5 + $0x2e0] ss:$8 sps:$4 sm:$0xff]  }
  0x89   :  { %1435 = vmatprep.subr.bf16.mxu1 %v2807_v29  ;;  %v2885_v29 = vld [vmem:[#allocation5 + $0x254] ss:$8 sps:$4 sm:$0xff]  }
  0x8b   :  { %562 = vmatpush1.bf16.msra.mxu0 %v2934_v62  ;;  %v107_v62 = vmax.f32 %v99_v59, 0.0 }
  0x8c   :  { %1436 = vmatpush1.bf16.msra.mxu1 %v2805_v32  ;;  %563 = vmatprep.subr.bf16.mxu0 %v2942_v0  ;;  %v2883_v32 = vld [vmem:[#allocation5 + $0x250] ss:$8 sps:$4 sm:$0xff]  }
  0x8d   :  { %1437 = vmatprep.subr.bf16.mxu1 %v2813_v34  ;;  %v2976_v34 = vld [vmem:[#allocation2 + $0x1d0] ss:$8 sps:$4 sm:$0xff]   ;;  %v597_v2 = vpack.c.bf16 %v107_v62, %v107_v62 }
  0x8f   :  { %564 = vmatpush1.bf16.msra.mxu0 %v2940_v6  ;;  %v2961_v6 = vld [vmem:[#allocation5 + $0x320] ss:$8 sps:$4 sm:$0xff]  }
  0x90   :  { %1438 = vmatpush1.bf16.msra.mxu1 %v2811_v37  ;;  %565 = vmatprep.subr.bf16.mxu0 %v2948_v7  ;;  %v2897_v37 = vld [vmem:[#allocation5 + $0x274] ss:$8 sps:$4 sm:$0xff]  }
  0x91   :  { %1439 = vmatprep.subr.bf16.mxu1 %v2819_v38  ;;  %v2982_v38 = vld [vmem:[#allocation2 + $0x1e0] ss:$8 sps:$4 sm:$0xff]   ;;  %v2969_v7 = vld [vmem:[#allocation5 + $0x334] ss:$8 sps:$4 sm:$0xff]  }
  0x93   :  { %566 = vmatpush1.bf16.msra.mxu0 %v2946_v12  ;;  %v2979_v12 = vld [vmem:[#allocation5 + $0x350] ss:$8 sps:$4 sm:$0xff]  }
  0x94   :  { %1440 = vmatpush1.bf16.msra.mxu1 %v2817_v41  ;;  %567 = vmatprep.subr.bf16.mxu0 %v2954_v13  ;;  %v2903_v41 = vld [vmem:[#allocation5 + $0x284] ss:$8 sps:$4 sm:$0xff]  }
  0x95   :  { %1441 = vmatprep.subr.bf16.mxu1 %v2825_v42  ;;  %v2988_v42 = vld [vmem:[#allocation2 + $0x1f0] ss:$8 sps:$4 sm:$0xff]   ;;  %v2987_v13 = vld [vmem:[#allocation5 + $0x364] ss:$8 sps:$4 sm:$0xff]  }
  0x97   :  { %568 = vmatpush1.bf16.msra.mxu0 %v2952_v17  ;;  %v2996_v17 = vld [vmem:[#allocation5 + $0x384] ss:$8 sps:$4 sm:$0xff]  }
  0x98   :  { %1442 = vmatpush1.bf16.msra.mxu1 %v2823_v45  ;;  %569 = vmatprep.subr.bf16.mxu0 %v2960_v18  ;;  %v110_v45 = vpack.c.bf16 %v90_v22, %v90_v22  ;;  %v2994_v18 = vld [vmem:[#allocation5 + $0x380] ss:$8 sps:$4 sm:$0xff]  }
  0x99   :  { %1443 = vmatprep.subr.bf16.mxu1 %v2831_v46  ;;  %v2907_v46 = vld [vmem:[#allocation5 + $0x290] ss:$8 sps:$4 sm:$0xff]   ;;  %v3000_v22 = vld [vmem:[#allocation5 + $0x3a0] ss:$8 sps:$4 sm:$0xff]  }
  0x9b   :  { %570 = vmatpush1.bf16.msra.mxu0 %v2958_v21  ;;  %v3002_v21 = vld [vmem:[#allocation5 + $0x3a4] ss:$8 sps:$4 sm:$0xff]  }
  0x9c   :  { %1444 = vmatpush1.bf16.msra.mxu1 %v2829_v49  ;;  %571 = vmatprep.subr.bf16.mxu0 %v2966_v23  ;;  %v2921_v49 = vld [vmem:[#allocation5 + $0x2b4] ss:$8 sps:$4 sm:$0xff]  }
  0x9d   :  { %1445 = vmatprep.subr.bf16.mxu1 %v2837_v50  ;;  %v2919_v50 = vld [vmem:[#allocation5 + $0x2b0] ss:$8 sps:$4 sm:$0xff]   ;;  %v3005_v23 = vld [vmem:[#allocation5 + $0x3b4] ss:$8 sps:$4 sm:$0xff]  }
  0x9f   :  { %572 = vmatpush1.bf16.msra.mxu0 %v2964_v26  ;;  %v3006_v26 = vld [vmem:[#allocation5 + $0x3c0] ss:$8 sps:$4 sm:$0xff]  }
  0xa0   :  { %1446 = vmatpush1.bf16.msra.mxu1 %v2835_v53  ;;  %573 = vmatprep.subr.bf16.mxu0 %v2972_v27  ;;  %v2933_v53 = vld [vmem:[#allocation5 + $0x2d4] ss:$8 sps:$4 sm:$0xff]  }
  0xa1   :  { %1447 = vmatprep.subr.bf16.mxu1 %v2843_v54  ;;  %v2931_v54 = vld [vmem:[#allocation5 + $0x2d0] ss:$8 sps:$4 sm:$0xff]   ;;  %v3011_v27 = vld [vmem:[#allocation5 + $0x3d4] ss:$8 sps:$4 sm:$0xff]  }
  0xa3   :  { %574 = vmatpush1.bf16.msra.mxu0 %v2970_v30  ;;  %v3012_v30 = vld [vmem:[#allocation5 + $0x3e0] ss:$8 sps:$4 sm:$0xff]  }
  0xa4   :  { %1448 = vmatpush1.bf16.msra.mxu1 %v2841_v57  ;;  %575 = vmatprep.subr.bf16.mxu0 %v2978_v31  ;;  %v96_v57 = vld [vmem:[%s3630_s20 + $0x20] sm:$0xff]  ;;  %v98_v31 = vld [vmem:[%s3630_s20 + $0x30] sm:$0xff] }
  0xa5   :  { %1449 = vmatprep.subr.bf16.mxu1 %v2849_v58  ;;  %v2945_v58 = vld [vmem:[#allocation5 + $0x2f4] ss:$8 sps:$4 sm:$0xff]   ;;  %v104_v60 = vmax.f32 %v96_v57, 0.0 }
  0xa7   :  { %576 = vmatpush1.bf16.msra.mxu0 %v2976_v34  ;;  %v594_v0 = vpack.c.bf16 %v104_v60, %v104_v60  ;;  %v3018_v34 = vld [vmem:[%s3615_s7 + $0x40] sm:$0xff]  }
  0xa8   :  { %1450 = vmatpush1.bf16.msra.mxu1 %v2847_v3  ;;  %577 = vmatprep.subr.bf16.mxu0 %v2984_v35  ;;  %v2957_v3 = vld [vmem:[#allocation5 + $0x314] ss:$8 sps:$4 sm:$0xff]   ;;  %v3019_v35 = vld [vmem:[%s3615_s7] sm:$0xff]  }
  0xa9   :  { %1460 = vmatprep.subr.bf16.mxu1 %v2855_v5  ;;  %v2963_v5 = vld [vmem:[#allocation5 + $0x324] ss:$8 sps:$4 sm:$0xff]  }
  0xab   :  { %1452 = vmatmul.mubr.bf16.vlgmr.msra.gmra.mrb[0].mxu1 %v592_v8  ;;  %578 = vmatpush1.bf16.msra.mxu0 %v2982_v38  ;;  %v2967_v8 = vld [vmem:[#allocation5 + $0x330] ss:$8 sps:$4 sm:$0xff]   ;;  %v3021_v38 = vld [vmem:[%s3615_s7 + $0x8] sm:$0xff]  }
  0xac   :  { %1461 = vmatpush1.bf16.msra.mxu1 %v2853_v9  ;;  %1492 = vmatprep.mubr.bf16.mxu1 %v595_v10  ;;  %v2975_v9 = vld [vmem:[#allocation5 + $0x344] ss:$8 sps:$4 sm:$0xff]   ;;  %v2973_v10 = vld [vmem:[#allocation5 + $0x340] ss:$8 sps:$4 sm:$0xff]  }
  0xad   :  { %1462 = vmatprep.subr.bf16.mxu1 %v2861_v11  ;;  %579 = vmatprep.subr.bf16.mxu0 %v2990_v39  ;;  %v2981_v11 = vld [vmem:[#allocation5 + $0x354] ss:$8 sps:$4 sm:$0xff]  }
  0xaf   :  { %580 = vmatpush1.bf16.msra.mxu0 %v2988_v42  ;;  %v3024_v42 = vld [vmem:[%s3615_s7 + $0x58] sm:$0xff]  }
  0xb0   :  { %1463 = vmatpush1.bf16.msra.mxu1 %v2859_v14  ;;  %v2985_v14 = vld [vmem:[#allocation5 + $0x360] ss:$8 sps:$4 sm:$0xff]   ;;  %2588 = vmatprep.subr.bf16.mxu0 %v3018_v34  ;;  %v3053_v34 = vld [vmem:[%s3617_s9 + $0x18] sm:$0xff]  }
  0xb1   :  { %1464 = vmatprep.subr.bf16.mxu1 %v2867_v16  ;;  %v2991_v16 = vld [vmem:[#allocation5 + $0x370] ss:$8 sps:$4 sm:$0xff]  }
  0xb2   :  { %582 = vmatmul.mubr.bf16.vlgmr.msra.gmra.mrb[0].mxu0 %v110_v45  ;;  %v3027_v45 = vld [vmem:[%s3615_s7 + $0x20] sm:$0xff]  }
  0xb3   :  { %2589 = vmatpush3.bf16.msra.mxu0 %v3019_v35  ;;  %v3200_v35 = vmov 0.0|0.0  }
  0xb4   :  { %1465 = vmatpush1.bf16.msra.mxu1 %v2865_v19  ;;  %v2999_v19 = vld [vmem:[#allocation5 + $0x394] ss:$8 sps:$4 sm:$0xff]  }
  0xb5   :  { %1466 = vmatprep.subr.bf16.mxu1 %v2873_v20  ;;  %v2997_v20 = vld [vmem:[#allocation5 + $0x390] ss:$8 sps:$4 sm:$0xff]  }
  0xb8   :  { %1467 = vmatpush1.bf16.msra.mxu1 %v2871_v24  ;;  %v3003_v24 = vld [vmem:[#allocation5 + $0x3b0] ss:$8 sps:$4 sm:$0xff]  }
  0xb9   :  { %1468 = vmatprep.subr.bf16.mxu1 %v2879_v25  ;;  %v3008_v25 = vld [vmem:[#allocation5 + $0x3c4] ss:$8 sps:$4 sm:$0xff]  }
  0xbc   :  { %1469 = vmatpush1.bf16.msra.mxu1 %v2877_v28  ;;  %v3009_v28 = vld [vmem:[#allocation5 + $0x3d0] ss:$8 sps:$4 sm:$0xff]  }
  0xbd   :  { %1470 = vmatprep.subr.bf16.mxu1 %v2885_v29  ;;  %v3014_v29 = vld [vmem:[#allocation5 + $0x3e4] ss:$8 sps:$4 sm:$0xff]  }
  0xc0   :  { %1471 = vmatpush1.bf16.msra.mxu1 %v2883_v32  ;;  %v3017_v32 = vld [vmem:[#allocation5 + $0x3f4] ss:$8 sps:$4 sm:$0xff]  }
  0xc1   :  { %1472 = vmatprep.subr.bf16.mxu1 %v2891_v33  ;;  %v106_v33 = vmax.f32 %v98_v31, 0.0  ;;  %v3198_v31 = vmov 0.0  }
  0xc3   :  { %v596_v39 = vpack.c.bf16 %v106_v33, %v106_v33  ;;  %v3052_v33 = vld [vmem:[%s3617_s9 + $0x10] sm:$0xff]  }
  0xc4   :  { %1473 = vmatpush1.bf16.msra.mxu1 %v2889_v36  ;;  %v3020_v36 = vld [vmem:[%s3615_s7 + $0x48] sm:$0xff]  }
  0xc5   :  { %1474 = vmatprep.subr.bf16.mxu1 %v2897_v37  ;;  %v3015_v37 = vld [vmem:[#allocation5 + $0x3f0] ss:$8 sps:$4 sm:$0xff]   ;;  %2590 = vmatprep.subr.bf16.mxu0 %v3020_v36 }
  0xc6   :  { %2591 = vmatpush3.bf16.msra.mxu0 %v3021_v38 }
  0xc8   :  { %1475 = vmatpush1.bf16.msra.mxu1 %v2895_v40  ;;  %v3022_v40 = vld [vmem:[%s3615_s7 + $0x50] sm:$0xff]  }
  0xc9   :  { %1476 = vmatprep.subr.bf16.mxu1 %v2903_v41  ;;  %v3023_v41 = vld [vmem:[%s3615_s7 + $0x10] sm:$0xff]   ;;  %2592 = vmatprep.subr.bf16.mxu0 %v3022_v40 }
  0xca   :  { %2593 = vmatpush3.bf16.msra.mxu0 %v3023_v41 }
  0xcb   :  { %2594 = vmatprep.subr.bf16.mxu0 %v3024_v42 }
  0xcc   :  { %1477 = vmatpush1.bf16.msra.mxu1 %v2901_v43  ;;  %v3025_v43 = vld [vmem:[%s3615_s7 + $0x18] sm:$0xff]  }
  0xcd   :  { %1478 = vmatprep.subr.bf16.mxu1 %v2909_v44  ;;  %v3026_v44 = vld [vmem:[%s3615_s7 + $0x60] sm:$0xff]  }
  0xce   :  { %2595 = vmatpush3.bf16.msra.mxu0 %v3025_v43 }
  0xcf   :  { %2596 = vmatprep.subr.bf16.mxu0 %v3026_v44 }
  0xd0   :  { %1479 = vmatpush1.bf16.msra.mxu1 %v2907_v46  ;;  %v3028_v46 = vld [vmem:[%s3615_s7 + $0x68] sm:$0xff]  }
  0xd1   :  { %1480 = vmatprep.subr.bf16.mxu1 %v2915_v47  ;;  %v3029_v47 = vld [vmem:[%s3615_s7 + $0x28] sm:$0xff]  }
  0xd2   :  { %2597 = vmatpush3.bf16.msra.mxu0 %v3027_v45  ;;  %v2562_v45 = vld [vmem:[%s3616_s8] ss:$0 sm:$0xff] }
  0xd3   :  { %2598 = vmatprep.subr.bf16.mxu0 %v3028_v46 }
  0xd4   :  { %1481 = vmatpush1.bf16.msra.mxu1 %v2913_v48  ;;  %v3030_v48 = vld [vmem:[%s3615_s7 + $0x70] sm:$0xff]  }
  0xd5   :  { %1482 = vmatprep.subr.bf16.mxu1 %v2921_v49  ;;  %v3031_v49 = vld [vmem:[%s3615_s7 + $0x30] sm:$0xff]  }
  0xd6   :  { %2599 = vmatpush3.bf16.msra.mxu0 %v3029_v47 }
  0xd7   :  { %2600 = vmatprep.subr.bf16.mxu0 %v3030_v48 }
  0xd8   :  { %1483 = vmatpush1.bf16.msra.mxu1 %v2919_v50  ;;  %v3032_v50 = vld [vmem:[%s3615_s7 + $0x78] sm:$0xff]  }
  0xd9   :  { %1484 = vmatprep.subr.bf16.mxu1 %v2927_v51  ;;  %v3033_v51 = vld [vmem:[%s3615_s7 + $0x38] sm:$0xff]  }
  0xda   :  { %2601 = vmatpush3.bf16.msra.mxu0 %v3031_v49  ;;  %v1980_v49 = vld [vmem:[%s3619_s11] sm:$0xff] }
  0xdb   :  { %2602 = vmatprep.subr.bf16.mxu0 %v3032_v50  ;;  %v1981_v50 = vld [vmem:[%s3619_s11 + $0x8] sm:$0xff] }
  0xdc   :  { %1485 = vmatpush1.bf16.msra.mxu1 %v2925_v52  ;;  %v3034_v52 = vld [vmem:[%s3614_s6 + $0x40] sm:$0xff]  }
  0xdd   :  { %1486 = vmatprep.subr.bf16.mxu1 %v2933_v53  ;;  %v178_v53 = vlaneseq }
  0xde   :  { %2603 = vmatpush3.bf16.msra.mxu0 %v3033_v51 }
  0xdf   :  { %2610 = vmatprep.subr.bf16.mxu0 %v3034_v52  ;;  %v2688_v52 = vpack.c.bf16 %v1981_v50, %v1980_v49 }
  0xe0   :  { %1487 = vmatpush1.bf16.msra.mxu1 %v2931_v54  ;;  %v179_v54 = vshrl.u32 %v178_v53, 7 }
  0xe1   :  { %1488 = vmatprep.subr.bf16.mxu1 %v2939_v55 }
  0xe2   :  { %v180_v55 = vsub.s32 0, %v179_v54  ;;  %v184_v57 = vsub.s32 1, %v179_v54 }
  0xe4   :  { %1489 = vmatpush1.bf16.msra.mxu1 %v2937_v56  ;;  %v176_v56 = vld [vmem:[%s3611_s3] sm:$0x3] }
  0xe5   :  { %1490 = vmatprep.subr.bf16.mxu1 %v2945_v58  ;;  %v181_v58 = vrot.slane %v176_v56, %v180_v55  ;;  %v185_v59 = vrot.slane %v176_v56, %v184_v57  ;;  %v1983_v56 = vld [vmem:[%s3619_s11 + $0x18] sm:$0xff] }
  0xe8   :  { %1491 = vmatpush1.bf16.msra.mxu1 %v2943_v61 }
  0xe9   :  { %1501 = vmatprep.subr.bf16.mxu1 %v2951_v63 }
  0xeb   :  { %1493 = vmatmul.mubr.bf16.vlgmr.msra.gmra.mrb[0].mxu1 %v594_v0 }
  0xec   :  { %1502 = vmatpush1.bf16.msra.mxu1 %v2949_v1  ;;  %1533 = vmatprep.mubr.bf16.mxu1 %v597_v2  ;;  %v726_v2 = vld [vmem:[%s3613_s5] sm:$0x3] }
  0xed   :  { %1503 = vmatprep.subr.bf16.mxu1 %v2957_v3  ;;  %v731_v3 = vrot.slane %v726_v2, %v180_v55  ;;  %v1982_v55 = vld [vmem:[%s3619_s11 + $0x10] sm:$0xff]  ;;  %s3201_s11 = smov 127  }
  0xf0   :  { %1504 = vmatpush1.bf16.msra.mxu1 %v2955_v4  ;;  %v735_v4 = vrot.slane %v726_v2, %v184_v57  ;;  %v2691_v57 = vpack.c.bf16 %v1983_v56, %v1982_v55 }
  0xf1   :  { %1505 = vmatprep.subr.bf16.mxu1 %v2963_v5 }
  0xf4   :  { %1506 = vmatpush1.bf16.msra.mxu1 %v2961_v6 }
  0xf5   :  { %1507 = vmatprep.subr.bf16.mxu1 %v2969_v7 }
  0xf8   :  { %1508 = vmatpush1.bf16.msra.mxu1 %v2967_v8 }
  0xf9   :  { %1509 = vmatprep.subr.bf16.mxu1 %v2975_v9 }
  0xfc   :  { %1510 = vmatpush1.bf16.msra.mxu1 %v2973_v10 }
  0xfd   :  { %1511 = vmatprep.subr.bf16.mxu1 %v2981_v11 }
 0x100   :  { %1512 = vmatpush1.bf16.msra.mxu1 %v2979_v12  ;;  %v3035_v12 = vld [vmem:[%s3614_s6] sm:$0xff]  }
 0x101   :  { %1513 = vmatprep.subr.bf16.mxu1 %v2987_v13 }
 0x104   :  { %1514 = vmatpush1.bf16.msra.mxu1 %v2985_v14  ;;  %v3036_v14 = vld [vmem:[%s3614_s6 + $0x48] sm:$0xff]  }
 0x105   :  { %1515 = vmatprep.subr.bf16.mxu1 %v2993_v15 }
 0x108   :  { %1516 = vmatpush1.bf16.msra.mxu1 %v2991_v16  ;;  %v3037_v16 = vld [vmem:[%s3614_s6 + $0x8] sm:$0xff]  }
 0x109   :  { %1517 = vmatprep.subr.bf16.mxu1 %v2996_v17  ;;  %v3038_v17 = vld [vmem:[%s3614_s6 + $0x50] sm:$0xff]  }
 0x10c   :  { %1518 = vmatpush1.bf16.msra.mxu1 %v2994_v18  ;;  %v3039_v18 = vld [vmem:[%s3614_s6 + $0x10] sm:$0xff]  }
 0x10d   :  { %1519 = vmatprep.subr.bf16.mxu1 %v2999_v19  ;;  %v3040_v19 = vld [vmem:[%s3614_s6 + $0x58] sm:$0xff]  }
 0x110   :  { %1520 = vmatpush1.bf16.msra.mxu1 %v2997_v20  ;;  %v3041_v20 = vld [vmem:[%s3614_s6 + $0x18] sm:$0xff]  }
 0x111   :  { %1521 = vmatprep.subr.bf16.mxu1 %v3002_v21  ;;  %v3042_v21 = vld [vmem:[%s3614_s6 + $0x60] sm:$0xff]  }
 0x114   :  { %1522 = vmatpush1.bf16.msra.mxu1 %v3000_v22  ;;  %v3043_v22 = vld [vmem:[%s3614_s6 + $0x20] sm:$0xff]  }
 0x115   :  { %1523 = vmatprep.subr.bf16.mxu1 %v3005_v23  ;;  %v3044_v23 = vld [vmem:[%s3614_s6 + $0x68] sm:$0xff]  }
 0x118   :  { %1524 = vmatpush1.bf16.msra.mxu1 %v3003_v24  ;;  %v3045_v24 = vld [vmem:[%s3614_s6 + $0x28] sm:$0xff]  }
 0x119   :  { %1525 = vmatprep.subr.bf16.mxu1 %v3008_v25  ;;  %v3046_v25 = vld [vmem:[%s3614_s6 + $0x70] sm:$0xff]  }
 0x11c   :  { %1526 = vmatpush1.bf16.msra.mxu1 %v3006_v26  ;;  %v3047_v26 = vld [vmem:[%s3614_s6 + $0x30] sm:$0xff]  }
 0x11d   :  { %1527 = vmatprep.subr.bf16.mxu1 %v3011_v27  ;;  %v3048_v27 = vld [vmem:[%s3614_s6 + $0x78] sm:$0xff]  }
 0x120   :  { %1528 = vmatpush1.bf16.msra.mxu1 %v3009_v28  ;;  %v3049_v28 = vld [vmem:[%s3614_s6 + $0x38] sm:$0xff]  }
 0x121   :  { %1529 = vmatprep.subr.bf16.mxu1 %v3014_v29 }
 0x124   :  { %1530 = vmatpush1.bf16.msra.mxu1 %v3012_v30  ;;  %v3050_v30 = vld [vmem:[%s3617_s9] sm:$0xff]  }
 0x125   :  { %1531 = vmatprep.subr.bf16.mxu1 %v3017_v32  ;;  %v3051_v32 = vld [vmem:[%s3617_s9 + $0x8] sm:$0xff]  }
 0x128   :  { %1532 = vmatpush1.bf16.msra.mxu1 %v3015_v37 }
 0x12b   :  { %1534 = vmatmul.mubr.bf16.vlgmr.msra.gmra.mrb[0].mxu1 %v596_v39 }
 0x185   :  { %v583_v60 = vpop.f32.mrb[0].mxu0 }
 0x186   :  { %v3413_v61 = vadd.f32 %v583_v60, %v181_v58  ;;  %v585_v62 = vpop.f32.mrb[1].mxu0  ;;  %v2563_v58 = vld [vmem:[%s3618_s10] ss:$0 sm:$0xff]  ;;  %s3202_s10 = smov 1  }
 0x187   :  { %v3415_v63 = vadd.f32 %v585_v62, %v185_v59  ;;  %v587_v0 = vpop.f32.mrb[2].mxu0 }
 0x188   :  { %1542 = vst [vmem:[#allocation10] sm:$0xff] %v3413_v61  ;;  %v588_v1 = vpop.f32.mrb[3].mxu0  ;;  %v1546_v29 = vpack.c.bf16 %v3413_v61, %v3413_v61 }
 0x189   :  { %1543 = vst [vmem:[#allocation10 + $0x8] sm:$0xff] %v3415_v63  ;;  %v1547_v15 = vpack.c.bf16 %v3415_v63, %v3415_v63 }
 0x1fe   :  { %v1535_v5 = vpop.f32.mrb[0].mxu1 }
 0x1ff   :  { %v3422_v6 = vadd.f32 %v1535_v5, %v731_v3  ;;  %v1537_v7 = vpop.f32.mrb[1].mxu1  ;;  %v2569_v3 = vld [vmem:[%s3620_s12] ss:$0 sm:$0xff] }
 0x200   :  { %v3424_v8 = vadd.f32 %v1537_v7, %v735_v4  ;;  %v1539_v9 = vpop.f32.mrb[2].mxu1 }
 0x201   :  { %1544 = vst [vmem:[#allocation10 + $0x10] sm:$0xff] %v3422_v6  ;;  %v1540_v10 = vpop.f32.mrb[3].mxu1  ;;  %v1548_v13 = vpack.c.bf16 %v3422_v6, %v3422_v6 }
 0x202   :  { %1545 = vst [vmem:[#allocation10 + $0x18] sm:$0xff] %v3424_v8  ;;  %v1549_v11 = vpack.c.bf16 %v3424_v8, %v3424_v8 }
 0x204   :  { %1742 = vmatprep.mubr.bf16.mxu0 %v1549_v11 }
 0x205   :  { %1743 = vmatmul.mubr.bf16.vlgmr.msra.gmra.mrb[4].mxu0 %v1548_v13 }
 0x206   :  { %2611 = vmatpush3.bf16.msra.mxu0 %v3035_v12  ;;  %1878 = vmatprep.mubr.bf16.mxu0 %v1547_v15  ;;  %v3203_v15 = vmov 0  }
 0x207   :  { %2612 = vmatprep.subr.bf16.mxu0 %v3036_v14  ;;  %2728 = vset.pattern.permute.xlu1 %v3203_v15 }
 0x20a   :  { %2613 = vmatpush3.bf16.msra.mxu0 %v3037_v16 }
 0x20b   :  { %2614 = vmatprep.subr.bf16.mxu0 %v3038_v17 }
 0x20e   :  { %2615 = vmatpush3.bf16.msra.mxu0 %v3039_v18 }
 0x20f   :  { %2616 = vmatprep.subr.bf16.mxu0 %v3040_v19 }
 0x212   :  { %2617 = vmatpush3.bf16.msra.mxu0 %v3041_v20 }
 0x213   :  { %2618 = vmatprep.subr.bf16.mxu0 %v3042_v21  ;;  %v3204_v21 = vmov 1  }
 0x214   :  { %2727 = vset.pattern.permute.xlu0 %v3204_v21 }
 0x216   :  { %2619 = vmatpush3.bf16.msra.mxu0 %v3043_v22 }
 0x217   :  { %2620 = vmatprep.subr.bf16.mxu0 %v3044_v23 }
 0x21a   :  { %2621 = vmatpush3.bf16.msra.mxu0 %v3045_v24  ;;  %v3054_v24 = vld [vmem:[%s3621_s13 + $0x40] sm:$0xff]  }
 0x21b   :  { %2622 = vmatprep.subr.bf16.mxu0 %v3046_v25  ;;  %v3055_v25 = vld [vmem:[%s3621_s13] sm:$0xff]  }
 0x21e   :  { %2623 = vmatpush3.bf16.msra.mxu0 %v3047_v26  ;;  %v3056_v26 = vld [vmem:[%s3621_s13 + $0x48] sm:$0xff]  }
 0x21f   :  { %2624 = vmatprep.subr.bf16.mxu0 %v3048_v27  ;;  %v3057_v27 = vld [vmem:[%s3621_s13 + $0x8] sm:$0xff]  }
 0x222   :  { %2625 = vmatpush3.bf16.msra.mxu0 %v3049_v28  ;;  %v3058_v28 = vld [vmem:[%s3621_s13 + $0x50] sm:$0xff]  }
 0x223   :  { %2664 = vmatprep.subr.bf16.mxu0 %v3198_v31 }
 0x225   :  { %1879 = vmatmul.mubr.bf16.vlgmr.msra.gmra.mrb[8].mxu0 %v1546_v29  ;;  %v3059_v29 = vld [vmem:[%s3621_s13 + $0x10] sm:$0xff]  }
 0x226   :  { %2665 = vmatpush3.bf16.msra.mxu0 %v3050_v30  ;;  %2672 = vmatprep.mubr.msk.bf16.mxu0 %vm3199_vm0, %v3198_v31  ;;  %v3060_v30 = vld [vmem:[%s3621_s13 + $0x58] sm:$0xff]  }
 0x227   :  { %2666 = vmatprep.subr.bf16.mxu0 %v3198_v31 }
 0x22a   :  { %2667 = vmatpush3.bf16.msra.mxu0 %v3051_v32  ;;  %v3062_v32 = vld [vmem:[%s3621_s13 + $0x60] sm:$0xff]  }
 0x22b   :  { %2668 = vmatprep.subr.bf16.mxu0 %v3198_v31 }
 0x22e   :  { %2669 = vmatpush3.bf16.msra.mxu0 %v3052_v33  ;;  %v3063_v33 = vld [vmem:[%s3621_s13 + $0x20] sm:$0xff]  }
 0x22f   :  { %2670 = vmatprep.subr.bf16.mxu0 %v3198_v31 }
 0x232   :  { %2671 = vmatpush3.bf16.msra.mxu0 %v3053_v34  ;;  %v3064_v34 = vld [vmem:[%s3621_s13 + $0x68] sm:$0xff]  }
 0x233   :  { %2687 = vmatprep.subr.bf16.mxu0 %v3200_v35 }
 0x2d8   :  { %v2604_v36 = vpop.f32.mrb[4].mxu0 }
 0x2d9   :  { %v2605_v37 = vpop.f32.mrb[5].mxu0 }
 0x2da   :  { %v2606_v38 = vadd.f32 %v2605_v37, %v2604_v36  ;;  %v2607_v39 = vpop.f32.mrb[6].mxu0 }
 0x2db   :  { %v2608_v40 = vpop.f32.mrb[7].mxu0  ;;  %v3067_v39 = vld [vmem:[%s3621_s13 + $0x30] sm:$0xff]  }
 0x2dc   :  { %v3068_v40 = vld [vmem:[%s3621_s13 + $0x78] sm:$0xff]  }
 0x2f8   :  { %v2626_v41 = vpop.f32.mrb[8].mxu0 }
 0x2f9   :  { %v2627_v42 = vpop.f32.mrb[9].mxu0 }
 0x2fa   :  { %v2628_v43 = vadd.f32 %v2627_v42, %v2626_v41  ;;  %v2629_v44 = vpop.f32.mrb[10].mxu0  ;;  %v3069_v41 = vld [vmem:[%s3621_s13 + $0x38] sm:$0xff]   ;;  %v2093_v42 = vand.u32 127, %v178_v53 }
 0x2fb   :  { %v2630_v46 = vpop.f32.mrb[11].mxu0 }
 0x2fc   :  { %v1881_v47 = vadd.f32 %v2628_v43, %v2606_v38  ;;  %v3066_v38 = vld [vmem:[%s3621_s13 + $0x70] sm:$0xff]   ;;  %vm2095_vm3 = vcmp.eq.s32.totalorder %v2093_v42, 1  ;;  %vm2094_vm4 = vcmp.eq.s32.totalorder %v2093_v42, 0 }
 0x2fe   :  { %v1893_v48 = vadd.f32 %v2562_v45, %v1881_v47 }
 0x300   :  { %v1894_v51 = vmax.f32 %v1893_v48, 0.0 }
 0x302   :  { %v1895_v54 = vpack.c.bf16 %v1894_v51, %v1894_v51 }
 0x304   :  { %2673 = vmatmul.mubr.msk.bf16.vlgmr.msra.gmra.mrb[12].mxu0 %vm1935_vm1, %v1895_v54 }
 0x305   :  { %2689 = vmatpush3.bf16.msra.mxu0 %v2688_v52  ;;  %2684 = vmatprep.mubr.msk.f32.mxu0 %vm3199_vm0, %v3198_v31  ;;  %v3061_v31 = vld [vmem:[%s3621_s13 + $0x18] sm:$0xff]  }
 0x306   :  { %2690 = vmatprep.subr.bf16.mxu0 %v3200_v35  ;;  %v3065_v35 = vld [vmem:[%s3621_s13 + $0x28] sm:$0xff]   ;;  %s3205_s13 = smov [#allocation8]  }
 0x307   :  { %s2311_s6 = sshll.u32 %s3205_s13, 4  ;;  %s2312_s6 = int_to_ptr.vmem [resolvable:$true] %s2311_s6 }
 0x308   :  { %s3120_s27 = scalar_lea.vmem %s2312_s6, 128  ;;  %p3125_p3 = scmp.lt.s32.totalorder %s2312_s6, %s2312_s6 }
 0x309   :  { %2692 = vmatpush3.bf16.msra.mxu0 %v2691_v57  ;;  %p3121_p2 = scmp.ne.s32.totalorder %s2312_s6, %s3120_s27  ;;  %p3126_p4 = scmp.lt.s32.totalorder %s3120_s27, %s3120_s27 }
 0x30a   :  { %2642 = vmatprep.subr.bf16.mxu0 %v3054_v24 }
 0x30b   :  { %p3127_p5 = por %p3126_p4, %p3125_p3 }
 0x30d   :  { %p3128_p6 = pnand %p3127_p5, %p3121_p2 }
 0x3d7   :  { %v1973_v59 = vpop.f32.mrb[12].mxu0 }
 0x3d8   :  { %v1974_v60 = vadd.f32 %v2563_v58, %v1973_v59  ;;  %v2674_v62 = vpop.f32.mrb[13].mxu0 }
 0x3d9   :  { %v1976_v0 = vpop.f32.mrb[14].mxu0 }
 0x3da   :  { %v1979_v1 = vmax.f32 %v1974_v60, 0.0  ;;  %v2675_v2 = vpop.f32.mrb[15].mxu0 }
 0x3dc   :  { %2685 = vmatmul.mubr.msk.f32.vlgmr.msra.gmra.mrb[16].mxu0 %vm1991_vm2, %v1979_v1 }
 0x3dd   :  { %2643 = vmatpush3.bf16.msra.mxu0 %v3055_v25 }
 0x3de   :  { %2644 = vmatprep.subr.bf16.mxu0 %v3056_v26 }
 0x3e1   :  { %2645 = vmatpush3.bf16.msra.mxu0 %v3057_v27 }
 0x3e2   :  { %2646 = vmatprep.subr.bf16.mxu0 %v3058_v28 }
 0x3e5   :  { %2647 = vmatpush3.bf16.msra.mxu0 %v3059_v29 }
 0x3e6   :  { %2648 = vmatprep.subr.bf16.mxu0 %v3060_v30 }
 0x3e9   :  { %2649 = vmatpush3.bf16.msra.mxu0 %v3061_v31 }
 0x3ea   :  { %2650 = vmatprep.subr.bf16.mxu0 %v3062_v32 }
 0x3ed   :  { %2651 = vmatpush3.bf16.msra.mxu0 %v3063_v33 }
 0x3ee   :  { %2652 = vmatprep.subr.bf16.mxu0 %v3064_v34 }
 0x3f1   :  { %2653 = vmatpush3.bf16.msra.mxu0 %v3065_v35 }
 0x3f2   :  { %2654 = vmatprep.subr.bf16.mxu0 %v3066_v38 }
 0x3f5   :  { %2655 = vmatpush3.bf16.msra.mxu0 %v3067_v39 }
 0x3f6   :  { %2656 = vmatprep.subr.bf16.mxu0 %v3068_v40 }
 0x3f9   :  { %2657 = vmatpush3.bf16.msra.mxu0 %v3069_v41 }
 0x4af   :  { %v2061_v4 = vpop.f32.mrb[16].mxu0 }
 0x4b0   :  { %v2062_v5 = vadd.f32 %v2569_v3, %v2061_v4  ;;  %v2686_v7 = vpop.f32.mrb[17].mxu0 }
 0x4b2   :  { %2066 = vrot.lane.b32.xlu0 %v2062_v5, %s3201_s11 }
 0x524   :  { %v2067_v9 = vpop.permute.xlu0 %2066 }
 0x525   :  { %v2069_v10 = vmax.f32 %v2062_v5, %v2067_v9 }
 0x527   :  { %2074 = vrot.lane.b32.xlu0 %v2069_v10, %s3202_s10  ;;  %v2070_v16 = vsub.f32 %v2062_v5, %v2069_v10 }
 0x529   :  { %v2071_v17 = vmul.f32 1.442695, %v2070_v16 }
 0x599   :  { %v2075_v11 = vpop.permute.xlu0 %2074 }
 0x59a   :  { %v2077_v12 = vsub.f32 %v2062_v5, %v2075_v11 }
 0x59c   :  { %v2078_v13 = vmul.f32 1.442695, %v2077_v12 }
 0x59e   :  { %3070 = vpow2.f32 %v2078_v13 }
 0x59f   :  { %3072 = vpow2.f32 %v2071_v17 }
 0x5a8   :  { %v3071_v14 = vpop.eup %3070 }
 0x5a9   :  { %2081 = vrot.lane.b32.xlu1 %v3071_v14, %s3201_s11  ;;  %v3073_v18 = vpop.eup %3072 }
 0x61b   :  { %v2082_v19 = vpop.permute.xlu1 %2081 }
 0x61c   :  { %v2084_v20 = vadd.f32 %v3073_v18, %v2082_v19 }
 0x61e   :  { %3074 = vrcp.f32 %v2084_v20 }
 0x628   :  { %v3075_v22 = vpop.eup %3074 }
 0x629   :  { %2088 = vrot.lane.b32.xlu1 %v3075_v22, %s3202_s10  ;;  %v2086_v23 = vmul.f32 %v3075_v22, %v3073_v18 }
 0x62d   :  { %2104 = vperm.xlu1 %2728, %v2086_v23  }
 0x69b   :  { %v2089_v36 = vpop.permute.xlu1 %2088 }
 0x69c   :  { %v2091_v37 = vmul.f32 %v3071_v14, %v2089_v36 }
 0x69e   :  { %2098 = vperm.xlu0 %2727, %v2091_v37  }
 0x6a2   :  { %2729 = vset.pattern.permute.xlu0 %v3203_v15 }
 0x6ac   :  { %v2105_v43 = vpop.permute.xlu1 %2104 }
 0x6ad   :  { %v2109_v44 = vmul.f32 %v3413_v61, %v2105_v43  ;;  %v2110_v46 = vmul.f32 %v3415_v63, %v2105_v43 }
 0x71d   :  { %v2099_v45 = vpop.permute.xlu0 %2098 }
 0x71e   :  { %v2101_v47 = vsel %vm2095_vm3, %v2099_v45, 0.0  ;;  %v2111_v48 = vmul.f32 %v3422_v6, %v2099_v45  ;;  %v2112_v49 = vmul.f32 %v3424_v8, %v2099_v45 }
 0x71f   :  { %v2107_v50 = vsel %vm2094_vm4, %v2105_v43, %v2101_v47 }
 0x720   :  { %v2113_v51 = vadd.f32 %v2111_v48, %v2109_v44  ;;  %v2114_v52 = vadd.f32 %v2112_v49, %v2110_v46  ;;  %2108 = vst [vmem:[#allocation8] sm:$0xff] %v2107_v50 }
 0x722   :  { %v2115_v54 = vmax.f32 %v2113_v51, 0.0  ;;  %v2116_v55 = vmax.f32 %v2114_v52, 0.0 }
 0x724   :  { %v2117_v53 = vpack.c.bf16 %v2115_v54, %v2115_v54  ;;  %v2118_v56 = vpack.c.bf16 %v2116_v55, %v2116_v55 }
 0x726   :  { %2286 = vmatprep.mubr.bf16.mxu0 %v2118_v56 }
 0x727   :  { %2287 = vmatmul.mubr.bf16.vlgmr.msra.gmra.mrb[20].mxu0 %v2117_v53 }
 0x728   :  { %3131 = shalt.err (!%p3128_p6)
}
 0x729   :  { %s3132_s0 = scalar_lea.hbm %s3624_s16, 128 }
 0x72a   :  { %p3133_p7 = scmp.ne.s32.totalorder %s3624_s16, %s3132_s0  ;;  %p3136_p8 = scmp.lt.u32.totalorder %s3132_s0, %s3624_s16 }
 0x72c   :  { %p3138_p9 = pnand %p3136_p8, %p3133_p7 }
 0x72e   :  { %3141 = shalt.err (!%p3138_p9)
}
 0x72f   :  { %2314 = dma.vmem_to_hbm [thread:$0]  %s2312_s6, 128, %s3624_s16, [#allocation9]  }
 0x730   :  { %s3206_s5 = smov [#allocation10]  }
 0x731   :  { %s2321_s19 = sshll.u32 %s3206_s5, 4  ;;  %s2322_s19 = int_to_ptr.vmem [resolvable:$true] %s2321_s19 }
 0x732   :  { %s3142_s2 = scalar_lea.vmem %s2322_s19, 512  ;;  %p3147_p11 = scmp.lt.s32.totalorder %s2322_s19, %s2322_s19 }
 0x733   :  { %p3143_p10 = scmp.ne.s32.totalorder %s2322_s19, %s3142_s2  ;;  %p3148_p12 = scmp.lt.s32.totalorder %s3142_s2, %s3142_s2 }
 0x735   :  { %p3149_p13 = por %p3148_p12, %p3147_p11 }
 0x737   :  { %p3150_p0 = pnand %p3149_p13, %p3143_p10 }
 0x739   :  { %3153 = shalt.err (!%p3150_p0)
}
 0x73a   :  { %s3154_s4 = scalar_lea.hbm %s3625_s17, 512 }
 0x73b   :  { %p3155_p1 = scmp.ne.s32.totalorder %s3625_s17, %s3154_s4  ;;  %p3158_p2 = scmp.lt.u32.totalorder %s3154_s4, %s3625_s17 }
 0x73d   :  { %p3160_p3 = pnand %p3158_p2, %p3155_p1 }
 0x73f   :  { %3163 = shalt.err (!%p3160_p3)
}
 0x740   :  { %2324 = dma.vmem_to_hbm [thread:$0]  %s2322_s19, 512, %s3625_s17, [#allocation9]   ;;  %v2571_v63 = vld [vmem:[%s3622_s14] ss:$0 sm:$0xff] }
 0x741   :  { %s3207_s24 = smov [#allocation7]  }
 0x742   :  { %s2301_s26 = sshll.u32 %s3207_s24, 4  ;;  %s2302_s26 = int_to_ptr.vmem [resolvable:$true] %s2301_s26 }
 0x743   :  { %s3164_s13 = scalar_lea.vmem %s2302_s26, 128  ;;  %p3169_p5 = scmp.lt.s32.totalorder %s2302_s26, %s2302_s26 }
 0x744   :  { %p3165_p4 = scmp.ne.s32.totalorder %s2302_s26, %s3164_s13  ;;  %p3170_p6 = scmp.lt.s32.totalorder %s3164_s13, %s3164_s13 }
 0x746   :  { %p3171_p7 = por %p3170_p6, %p3169_p5 }
 0x748   :  { %p3172_p8 = pnand %p3171_p7, %p3165_p4 }
 0x7fa   :  { %v2658_v61 = vpop.f32.mrb[20].mxu0 }
 0x7fb   :  { %v2659_v6 = vpop.f32.mrb[21].mxu0 }
 0x7fc   :  { %v2660_v8 = vadd.f32 %v2659_v6, %v2658_v61  ;;  %v2661_v57 = vpop.f32.mrb[22].mxu0 }
 0x7fd   :  { %v2662_v58 = vpop.f32.mrb[23].mxu0 }
 0x7fe   :  { %v2289_v59 = vadd.f32 %v2660_v8, %v2571_v63 }
 0x800   :  { %2294 = vst [vmem:[#allocation7] sm:$0xff] %v2289_v59 }
 0x801   :  { %3175 = shalt.err (!%p3172_p8)
}
 0x802   :  { %s3176_s14 = scalar_lea.hbm %s3623_s15, 128 }
 0x803   :  { %p3177_p9 = scmp.ne.s32.totalorder %s3623_s15, %s3176_s14  ;;  %p3180_p10 = scmp.lt.u32.totalorder %s3176_s14, %s3623_s15 }
 0x805   :  { %p3182_p11 = pnand %p3180_p10, %p3177_p9 }
 0x807   :  { %3185 = shalt.err (!%p3182_p11)
}
 0x808   :  { %2304 = dma.vmem_to_hbm [thread:$0]  %s2302_s26, 128, %s3623_s15, [#allocation4]  }
 0x809   :  { %3190 = dma.done.wait [#allocation4], 128  }
 0x80a   :  { %3191 = vsyncadd [#allocation4], 4294967168 }
 0x80b   :  { %3192 = dma.done.wait [#allocation9], 640  }
 0x80c   :  { %3193 = vsyncadd [#allocation9], 4294966656 }
 0x80d   :  { %2334 = vsyncpa [#allocation3], 1 }
 0x80e   :  { %2335 = vsyncpa [#allocation6], 1 }
 0x80f   :  { %2336 = vsyncpa [#allocation4], 1 }
 0x810   :  { %2337 = vsyncpa [#allocation9], 1 }

</bundles_post_ra>
